<compile_context>
chip_gen: v5e
topology: v5e:2x2
jax: 0.10.0
libtpu: 0.0.40
codegen_flags: <defaults>
</compile_context>

<pallas_src>
import functools

import jax
import jax.numpy as jnp
from jax import lax
from jax.experimental import pallas as pl
from jax.experimental.pallas import tpu as pltpu

N_BRANCHES = 4      # num_dendrites
HIDDEN = 32         # DDLayer output_dim == GATConv(32, 32) channels
GAT_HEADS = 4       # conv1 heads
NEG_SLOPE = 0.2     # GATConv leaky_relu default
CPAD = 128          # lane-dense padding of the class dimension


# ---------------------------------------------------------------------------
# The Pallas kernel: whole DDGAT forward for a small graph held in VMEM.
# ---------------------------------------------------------------------------
def ddgat_kernel(x_ref, amean_ref,
                 wbcat_ref, bbcat_ref, w1bd_ref, b1cat_ref, w2bd_ref, b2cat_ref,
                 woutg_ref, bout_ref,
                 wg1_ref, a1d_ref, a1s_ref, bias1_ref,
                 wg2_ref, a2d_ref, a2s_ref, bias2_ref,
                 out_ref, h1_scr, *, num_classes):
    f32, bf16 = jnp.float32, jnp.bfloat16
    amean = amean_ref[...]                                   # [N, N] bf16
    n = amean.shape[0]

    # GAT neighborhood mask (existing edges + self loops), computed once on the
    # bf16 operand (no f32 upcast) and reused by all 5 attention heads.
    row = lax.broadcasted_iota(jnp.int32, (n, n), 0)
    col = lax.broadcasted_iota(jnp.int32, (n, n), 1)
    mask = jnp.logical_or(amean > 0, row == col)

    # ---- DMCU_DAE: 4 dendritic branches fused into 128-wide bf16 MXU matmuls ----
    x = x_ref[...].astype(bf16)
    h = jnp.dot(x, wbcat_ref[...], preferred_element_type=f32) + bbcat_ref[...]   # [N, 128]
    hb = h.astype(bf16)                                       # bf16 shadow for amean passes
    lane = lax.broadcasted_iota(jnp.int32, h.shape, 1)
    # scale-i message passing: branch i (lanes [32i, 32i+32)) needs amean^i @ h,
    # done as 3 cumulative full-width bf16 passes with lane masks.
    for i in range(1, N_BRANCHES):
        hp = jnp.dot(amean, hb, preferred_element_type=f32)
        sel = lane >= i * HIDDEN
        h = jnp.where(sel, hp, h)
        hb = jnp.where(sel, hp.astype(bf16), hb)
    # per-branch Linear -> ReLU -> Linear as two block-diagonal [128,128] matmuls
    h = jnp.dot(hb, w1bd_ref[...], preferred_element_type=f32) + b1cat_ref[...]
    h = jnp.maximum(h, 0.0)
    h = jnp.dot(h.astype(bf16), w2bd_ref[...], preferred_element_type=f32) + b2cat_ref[...]
    # branch gates were folded into woutg host-side: (h*g) @ wout == h @ (g*wout)
    x0 = jnp.dot(h.astype(bf16), woutg_ref[...], preferred_element_type=f32) + bout_ref[...]

    def attend(dst_col, src_row, vals_b):
        """One GAT head: dst_col [N,1], src_row [1,N], vals_b [N,D] bf16."""
        e = dst_col + src_row                                 # VPU broadcast add
        e = jnp.where(e >= 0, e, NEG_SLOPE * e)               # leaky_relu
        e = jnp.where(mask, e, -1e30)
        e = e - jnp.max(e, axis=1, keepdims=True)
        p = jnp.exp(e)     # masked entries underflow to exactly 0 (self loop keeps row max finite)
        p = p * pl.reciprocal(jnp.sum(p, axis=1, keepdims=True), approx=True)
        return jnp.dot(p.astype(bf16), vals_b, preferred_element_type=f32)

    # ---- GATConv 1 (heads=4, concat) + ReLU ----
    xh1 = jnp.dot(x0.astype(bf16), wg1_ref[...], preferred_element_type=f32)      # [N, 128]
    xh1b = xh1.astype(bf16)
    # packed attention scores: all 4 dst scores in one matmul, all 4 src rows in one
    dst1 = jnp.dot(xh1b, a1d_ref[...], preferred_element_type=f32)                # [N, 4]
    src1 = lax.dot_general(a1s_ref[...], xh1b, (((1,), (1,)), ((), ())),
                           preferred_element_type=f32)                            # [4, N]
    bias1 = bias1_ref[...]
    for hh in range(GAT_HEADS):
        lo, hi = hh * HIDDEN, (hh + 1) * HIDDEN
        head = attend(dst1[:, hh:hh + 1], src1[hh:hh + 1, :], xh1b[:, lo:hi])
        # TODO(synk): F.dropout(p=0.6, training=...) implemented as identity (eval mode).
        h1_scr[:, lo:hi] = jnp.maximum(head + bias1[:, lo:hi], 0.0)

    # ---- GATConv 2 (heads=1); wg2 projection fused, class dim padded to 128 lanes ----
    x2 = jnp.dot(h1_scr[...].astype(bf16), wg2_ref[...], preferred_element_type=f32)  # [N, CPAD]
    x2b = x2.astype(bf16)
    dst2 = jnp.dot(x2b, a2d_ref[...], preferred_element_type=f32)                 # [N, 1]
    src2 = lax.dot_general(a2s_ref[...], x2b, (((1,), (1,)), ((), ())),
                           preferred_element_type=f32)                            # [1, N]
    logits = attend(dst2, src2, x2b) + bias2_ref[...]                             # [N, CPAD]

    clane = lax.broadcasted_iota(jnp.int32, logits.shape, 1)
    logits = jnp.where(clane < num_classes, logits, -1e30)

    # ---- log_softmax (padded lanes stay huge-negative; sliced off outside) ----
    z = logits - jnp.max(logits, axis=1, keepdims=True)
    lse = jnp.log(jnp.sum(jnp.exp(z), axis=1, keepdims=True))
    out_ref[...] = z - lse


# ---------------------------------------------------------------------------
# Glue: graph densification, parameter init/fusion, pallas_call wrapper, reference.
# ---------------------------------------------------------------------------
def densify_graph(edge_index, num_nodes):
    src, dst = edge_index[0], edge_index[1]
    ones = jnp.ones(src.shape, jnp.float32)
    cnt = jnp.zeros((num_nodes, num_nodes), jnp.float32).at[dst, src].add(ones)
    deg = jnp.sum(cnt, axis=1, keepdims=True)
    a_mean = jnp.where(deg > 0, cnt / jnp.maximum(deg, 1.0), 0.0)
    eye = jnp.eye(num_nodes, dtype=jnp.float32)
    # GATConv: remove existing self loops, then add one self loop per node.
    adj = jnp.where(eye > 0, 1.0, (cnt > 0).astype(jnp.float32))
    return a_mean, adj


def init_params(key, num_features, num_classes):
    ks = jax.random.split(key, 16)

    def w(k, shape, scale=0.1):
        return (scale * jax.random.normal(k, shape)).astype(jnp.float32)

    return {
        "wb": w(ks[0], (N_BRANCHES, num_features, HIDDEN)),
        "bb": w(ks[1], (N_BRANCHES, HIDDEN)),
        "w1": w(ks[2], (N_BRANCHES, HIDDEN, HIDDEN)),
        "b1": w(ks[3], (N_BRANCHES, HIDDEN)),
        "w2": w(ks[4], (N_BRANCHES, HIDDEN, HIDDEN)),
        "b2": w(ks[5], (N_BRANCHES, HIDDEN)),
        "bg": jnp.ones((1, N_BRANCHES), jnp.float32),        # torch.ones(num_branches)
        "temp": jnp.ones((1, 1), jnp.float32),               # temperature = 1.0
        "wout": w(ks[6], (N_BRANCHES * HIDDEN, HIDDEN)),
        "bout": w(ks[7], (1, HIDDEN)),
        "wg1": w(ks[8], (HIDDEN, GAT_HEADS * HIDDEN)),
        "as1": w(ks[9], (GAT_HEADS, HIDDEN)),
        "ad1": w(ks[10], (GAT_HEADS, HIDDEN)),
        "bias1": w(ks[11], (1, GAT_HEADS * HIDDEN)),
        "wg2": w(ks[12], (GAT_HEADS * HIDDEN, num_classes)),
        "as2": w(ks[13], (1, num_classes)),
        "ad2": w(ks[14], (1, num_classes)),
        "bias2": w(ks[15], (1, num_classes)),
    }


def _block_diag(blocks):
    """[B, D, D] -> [B*D, B*D] block-diagonal (host-side, inside jit)."""
    b, d, _ = blocks.shape
    out = jnp.zeros((b * d, b * d), blocks.dtype)
    for i in range(b):
        out = out.at[i * d:(i + 1) * d, i * d:(i + 1) * d].set(blocks[i])
    return out


def _fuse_params(params, num_features, num_classes):
    """Re-layout per-branch / per-head params into MXU-friendly fused bf16 operands."""
    bf16 = jnp.bfloat16
    gates = jax.nn.softmax(params["bg"] / params["temp"], axis=1)            # [1, 4]
    wb_cat = jnp.transpose(params["wb"], (1, 0, 2)).reshape(
        num_features, N_BRANCHES * HIDDEN)                                    # [F, 128]
    bb_cat = params["bb"].reshape(1, N_BRANCHES * HIDDEN)
    w1_bd = _block_diag(params["w1"])                                         # [128, 128]
    b1_cat = params["b1"].reshape(1, N_BRANCHES * HIDDEN)
    w2_bd = _block_diag(params["w2"])                                         # [128, 128]
    b2_cat = params["b2"].reshape(1, N_BRANCHES * HIDDEN)
    # fold the per-branch gate into output_layer rows: (h*g) @ wout == h @ (g*wout)
    gexp = jnp.repeat(gates[0], HIDDEN)                                       # [128]
    wout_g = params["wout"] * gexp[:, None]

    # packed conv1 attention vectors: dst as [128, heads] columns, src as [heads, 128] rows
    D = GAT_HEADS * HIDDEN
    a1d = jnp.zeros((D, GAT_HEADS), jnp.float32)
    a1s = jnp.zeros((GAT_HEADS, D), jnp.float32)
    for hh in range(GAT_HEADS):
        a1d = a1d.at[hh * HIDDEN:(hh + 1) * HIDDEN, hh].set(params["ad1"][hh])
        a1s = a1s.at[hh, hh * HIDDEN:(hh + 1) * HIDDEN].set(params["as1"][hh])

    # zero-pad conv2's class dimension to a full 128-lane slab (lane-dense store)
    wg2_p = jnp.zeros((D, CPAD), jnp.float32).at[:, :num_classes].set(params["wg2"])
    a2d = jnp.zeros((CPAD, 1), jnp.float32).at[:num_classes, 0].set(params["ad2"][0])
    a2s = jnp.zeros((1, CPAD), jnp.float32).at[0, :num_classes].set(params["as2"][0])
    bias2_p = jnp.zeros((1, CPAD), jnp.float32).at[:, :num_classes].set(params["bias2"])

    return (wb_cat.astype(bf16), bb_cat, w1_bd.astype(bf16), b1_cat,
            w2_bd.astype(bf16), b2_cat, wout_g.astype(bf16), params["bout"],
            params["wg1"].astype(bf16), a1d.astype(bf16), a1s.astype(bf16),
            params["bias1"],
            wg2_p.astype(bf16), a2d.astype(bf16), a2s.astype(bf16), bias2_p)


@jax.jit
def ddgat_forward(x, edge_index, params):
    n, f = x.shape
    c = params["wg2"].shape[1]
    a_mean, _ = densify_graph(edge_index, n)
    fused = _fuse_params(params, f, c)
    inputs = (x, a_mean.astype(jnp.bfloat16)) + fused     # bf16 for the O(N^2) operand

    def full_spec(arr):
        nd = arr.ndim
        return pl.BlockSpec(arr.shape, lambda i, _nd=nd: (0,) * _nd)

    out_pad = pl.pallas_call(
        functools.partial(ddgat_kernel, num_classes=c),
        out_shape=jax.ShapeDtypeStruct((n, CPAD), jnp.float32),
        grid=(1,),
        in_specs=[full_spec(a) for a in inputs],
        out_specs=pl.BlockSpec((n, CPAD), lambda i: (0, 0)),
        scratch_shapes=[pltpu.VMEM((n, GAT_HEADS * HIDDEN), jnp.float32)],
        compiler_params=pltpu.CompilerParams(
            dimension_semantics=("arbitrary",),
            vmem_limit_bytes=32 * 1024 * 1024),      # v7x-safe (64 MiB physical)
    )(*inputs)
    # TODO(synk): for large N, tile the dst-row dimension on a "parallel" grid axis
    # (v7x dual-TC), stream amean row blocks through BlockSpec (double-buffered),
    # single-buffer the 16 grid-invariant weights, and size the row tile to roughly
    # half the v6e choice on v7x; at this scale everything fits one grid step.
    return out_pad[:, :c]


def ddgat_reference(x, edge_index, params):
    """Pure-JAX reference mirroring the PyTorch forward semantics (f32)."""
    n = x.shape[0]
    a_mean, adj = densify_graph(edge_index, n)
    gates = jax.nn.softmax(params["bg"] / params["temp"], axis=1)

    outs = []
    for i in range(N_BRANCHES):
        h = x @ params["wb"][i] + params["bb"][i]
        for _ in range(i):
            h = a_mean @ h
        h = jnp.maximum(h @ params["w1"][i] + params["b1"][i], 0.0)
        h = h @ params["w2"][i] + params["b2"][i]
        outs.append(h * gates[0, i])
    x0 = jnp.concatenate(outs, axis=1) @ params["wout"] + params["bout"]

    def gat(xin, wg, asr, adst, bias, heads, d):
        xh = xin @ wg
        hs = []
        for hh in range(heads):
            xt = xh[:, hh * d:(hh + 1) * d]
            a_s = jnp.sum(xt * asr[hh], axis=1)
            a_d = jnp.sum(xt * adst[hh], axis=1)
            e = a_d[:, None] + a_s[None, :]
            e = jnp.where(e >= 0, e, NEG_SLOPE * e)
            e = jnp.where(adj > 0, e, -1e30)
            p = jax.nn.softmax(e, axis=1)
            p = jnp.where(adj > 0, p, 0.0)
            hs.append(p @ xt)
        return jnp.concatenate(hs, axis=1) + bias

    h1 = jnp.maximum(
        gat(x0, params["wg1"], params["as1"], params["ad1"], params["bias1"],
            GAT_HEADS, HIDDEN), 0.0)
    c = params["wg2"].shape[1]
    logits = gat(h1, params["wg2"], params["as2"], params["ad2"],
                 params["bias2"], 1, c)
    return jax.nn.log_softmax(logits, axis=1)


if __name__ == "__main__":
    key = jax.random.PRNGKey(0)
    kx, kp = jax.random.split(key)

    num_nodes, num_features, num_classes = 8, 16, 4
    x = jax.random.normal(kx, (num_nodes, num_features), jnp.float32)
    # Small directed graph (no duplicate edges): ring plus a few chords.
    src = jnp.array([0, 1, 2, 3, 4, 5, 6, 7, 0, 2, 4, 6], jnp.int32)
    dst = jnp.array([1, 2, 3, 4, 5, 6, 7, 0, 4, 6, 0, 2], jnp.int32)
    edge_index = jnp.stack([src, dst], axis=0)

    params = init_params(kp, num_features, num_classes)

    out = jax.block_until_ready(ddgat_forward(x, edge_index, params))
    ref = ddgat_reference(x, edge_index, params)

    assert out.shape == (num_nodes, num_classes)
    assert bool(jnp.all(jnp.isfinite(out)))
    max_err = float(jnp.max(jnp.abs(out - ref)))
    assert max_err < 2e-2, f"mismatch vs reference: {max_err}"
    print("KERNEL_OK")
</pallas_src>

<mosaic_0001>
module attributes {stable_mosaic.version = 11 : i64} {
  func.func @ddgat_kernel(%arg0: i32, %arg1: memref<8x16xf32, #tpu.memory_space<vmem>>, %arg2: memref<8x8xbf16, #tpu.memory_space<vmem>>, %arg3: memref<16x128xbf16, #tpu.memory_space<vmem>>, %arg4: memref<1x128xf32, #tpu.memory_space<vmem>>, %arg5: memref<128x128xbf16, #tpu.memory_space<vmem>>, %arg6: memref<1x128xf32, #tpu.memory_space<vmem>>, %arg7: memref<128x128xbf16, #tpu.memory_space<vmem>>, %arg8: memref<1x128xf32, #tpu.memory_space<vmem>>, %arg9: memref<128x32xbf16, #tpu.memory_space<vmem>>, %arg10: memref<1x32xf32, #tpu.memory_space<vmem>>, %arg11: memref<32x128xbf16, #tpu.memory_space<vmem>>, %arg12: memref<128x4xbf16, #tpu.memory_space<vmem>>, %arg13: memref<4x128xbf16, #tpu.memory_space<vmem>>, %arg14: memref<1x128xf32, #tpu.memory_space<vmem>>, %arg15: memref<128x128xbf16, #tpu.memory_space<vmem>>, %arg16: memref<128x1xbf16, #tpu.memory_space<vmem>>, %arg17: memref<1x128xbf16, #tpu.memory_space<vmem>>, %arg18: memref<1x128xf32, #tpu.memory_space<vmem>>, %arg19: memref<8x128xf32, #tpu.memory_space<vmem>>, %arg20: memref<8x128xf32, #tpu.memory_space<vmem>>) attributes {dimension_semantics = [#tpu.dimension_semantics<arbitrary>], iteration_bounds = array<i64: 1>, scalar_prefetch = 0 : i64, scratch_operands = 1 : i64, tpu.core_type = #tpu.core_type<tc>, window_params = [{pipeline_mode = #tpu.pipeline_mode<synchronous>, transform_indices = @transform_0, window_bounds = array<i64: 8, 16>}, {pipeline_mode = #tpu.pipeline_mode<synchronous>, transform_indices = @transform_1, window_bounds = array<i64: 8, 8>}, {pipeline_mode = #tpu.pipeline_mode<synchronous>, transform_indices = @transform_2, window_bounds = array<i64: 16, 128>}, {pipeline_mode = #tpu.pipeline_mode<synchronous>, transform_indices = @transform_3, window_bounds = array<i64: 1, 128>}, {pipeline_mode = #tpu.pipeline_mode<synchronous>, transform_indices = @transform_4, window_bounds = array<i64: 128, 128>}, {pipeline_mode = #tpu.pipeline_mode<synchronous>, transform_indices = @transform_5, window_bounds = array<i64: 1, 128>}, {pipeline_mode = #tpu.pipeline_mode<synchronous>, transform_indices = @transform_6, window_bounds = array<i64: 128, 128>}, {pipeline_mode = #tpu.pipeline_mode<synchronous>, transform_indices = @transform_7, window_bounds = array<i64: 1, 128>}, {pipeline_mode = #tpu.pipeline_mode<synchronous>, transform_indices = @transform_8, window_bounds = array<i64: 128, 32>}, {pipeline_mode = #tpu.pipeline_mode<synchronous>, transform_indices = @transform_9, window_bounds = array<i64: 1, 32>}, {pipeline_mode = #tpu.pipeline_mode<synchronous>, transform_indices = @transform_10, window_bounds = array<i64: 32, 128>}, {pipeline_mode = #tpu.pipeline_mode<synchronous>, transform_indices = @transform_11, window_bounds = array<i64: 128, 4>}, {pipeline_mode = #tpu.pipeline_mode<synchronous>, transform_indices = @transform_12, window_bounds = array<i64: 4, 128>}, {pipeline_mode = #tpu.pipeline_mode<synchronous>, transform_indices = @transform_13, window_bounds = array<i64: 1, 128>}, {pipeline_mode = #tpu.pipeline_mode<synchronous>, transform_indices = @transform_14, window_bounds = array<i64: 128, 128>}, {pipeline_mode = #tpu.pipeline_mode<synchronous>, transform_indices = @transform_15, window_bounds = array<i64: 128, 1>}, {pipeline_mode = #tpu.pipeline_mode<synchronous>, transform_indices = @transform_16, window_bounds = array<i64: 1, 128>}, {pipeline_mode = #tpu.pipeline_mode<synchronous>, transform_indices = @transform_17, window_bounds = array<i64: 1, 128>}, {pipeline_mode = #tpu.pipeline_mode<synchronous>, transform_indices = @transform_18, window_bounds = array<i64: 8, 128>}]} {
    %c0 = arith.constant 0 : index
    %c0_0 = arith.constant 0 : index
    %0 = vector.load %arg2[%c0, %c0_0] : memref<8x8xbf16, #tpu.memory_space<vmem>>, vector<8x8xbf16>
    %1 = tpu.iota {dimensions = array<i32: 0>} : vector<8x8xi32>
    %2 = tpu.iota {dimensions = array<i32: 1>} : vector<8x8xi32>
    %cst = arith.constant 0.000000e+00 : bf16
    %3 = vector.broadcast %cst : bf16 to vector<8x8xbf16>
    %4 = arith.cmpf ogt, %0, %3 : vector<8x8xbf16>
    %5 = arith.cmpi eq, %1, %2 : vector<8x8xi32>
    %6 = arith.ori %4, %5 : vector<8x8xi1>
    %c0_1 = arith.constant 0 : index
    %c0_2 = arith.constant 0 : index
    %7 = vector.load %arg1[%c0_1, %c0_2] : memref<8x16xf32, #tpu.memory_space<vmem>>, vector<8x16xf32>
    %8 = arith.truncf %7 : vector<8x16xf32> to vector<8x16xbf16>
    %c0_3 = arith.constant 0 : index
    %c0_4 = arith.constant 0 : index
    %9 = vector.load %arg3[%c0_3, %c0_4] : memref<16x128xbf16, #tpu.memory_space<vmem>>, vector<16x128xbf16>
    %cst_5 = arith.constant dense<0.000000e+00> : vector<8x128xf32>
    %10 = tpu.matmul %8, %9, %cst_5 {dimension_numbers = #tpu.dot_dimension_numbers<[1], [0], [0], [1], [0, 0, 1, 1], [], []>} : vector<8x16xbf16>, vector<16x128xbf16>, vector<8x128xf32> -> vector<8x128xf32>
    %c0_6 = arith.constant 0 : index
    %c0_7 = arith.constant 0 : index
    %11 = vector.load %arg4[%c0_6, %c0_7] : memref<1x128xf32, #tpu.memory_space<vmem>>, vector<1x128xf32>
    %12 = vector.broadcast %11 : vector<1x128xf32> to vector<8x128xf32>
    %13 = arith.addf %10, %12 : vector<8x128xf32>
    %14 = arith.truncf %13 : vector<8x128xf32> to vector<8x128xbf16>
    %15 = tpu.iota {dimensions = array<i32: 1>} : vector<8x128xi32>
    %cst_8 = arith.constant dense<0.000000e+00> : vector<8x128xf32>
    %16 = tpu.matmul %0, %14, %cst_8 {dimension_numbers = #tpu.dot_dimension_numbers<[1], [0], [0], [1], [0, 0, 1, 1], [], []>} : vector<8x8xbf16>, vector<8x128xbf16>, vector<8x128xf32> -> vector<8x128xf32>
    %c32_i32 = arith.constant 32 : i32
    %17 = vector.broadcast %c32_i32 : i32 to vector<8x128xi32>
    %18 = arith.cmpi sge, %15, %17 : vector<8x128xi32>
    %19 = arith.truncf %16 : vector<8x128xf32> to vector<8x128xbf16>
    %20 = arith.select %18, %19, %14 : vector<8x128xi1>, vector<8x128xbf16>
    %cst_9 = arith.constant dense<0.000000e+00> : vector<8x128xf32>
    %21 = tpu.matmul %0, %20, %cst_9 {dimension_numbers = #tpu.dot_dimension_numbers<[1], [0], [0], [1], [0, 0, 1, 1], [], []>} : vector<8x8xbf16>, vector<8x128xbf16>, vector<8x128xf32> -> vector<8x128xf32>
    %c64_i32 = arith.constant 64 : i32
    %22 = vector.broadcast %c64_i32 : i32 to vector<8x128xi32>
    %23 = arith.cmpi sge, %15, %22 : vector<8x128xi32>
    %24 = arith.truncf %21 : vector<8x128xf32> to vector<8x128xbf16>
    %25 = arith.select %23, %24, %20 : vector<8x128xi1>, vector<8x128xbf16>
    %cst_10 = arith.constant dense<0.000000e+00> : vector<8x128xf32>
    %26 = tpu.matmul %0, %25, %cst_10 {dimension_numbers = #tpu.dot_dimension_numbers<[1], [0], [0], [1], [0, 0, 1, 1], [], []>} : vector<8x8xbf16>, vector<8x128xbf16>, vector<8x128xf32> -> vector<8x128xf32>
    %c96_i32 = arith.constant 96 : i32
    %27 = vector.broadcast %c96_i32 : i32 to vector<8x128xi32>
    %28 = arith.cmpi sge, %15, %27 : vector<8x128xi32>
    %29 = arith.truncf %26 : vector<8x128xf32> to vector<8x128xbf16>
    %30 = arith.select %28, %29, %25 : vector<8x128xi1>, vector<8x128xbf16>
    %c0_11 = arith.constant 0 : index
    %c0_12 = arith.constant 0 : index
    %31 = vector.load %arg5[%c0_11, %c0_12] : memref<128x128xbf16, #tpu.memory_space<vmem>>, vector<128x128xbf16>
    %cst_13 = arith.constant dense<0.000000e+00> : vector<8x128xf32>
    %32 = tpu.matmul %30, %31, %cst_13 {dimension_numbers = #tpu.dot_dimension_numbers<[1], [0], [0], [1], [0, 0, 1, 1], [], []>} : vector<8x128xbf16>, vector<128x128xbf16>, vector<8x128xf32> -> vector<8x128xf32>
    %c0_14 = arith.constant 0 : index
    %c0_15 = arith.constant 0 : index
    %33 = vector.load %arg6[%c0_14, %c0_15] : memref<1x128xf32, #tpu.memory_space<vmem>>, vector<1x128xf32>
    %34 = vector.broadcast %33 : vector<1x128xf32> to vector<8x128xf32>
    %35 = arith.addf %32, %34 : vector<8x128xf32>
    %cst_16 = arith.constant 0.000000e+00 : f32
    %36 = vector.broadcast %cst_16 : f32 to vector<8x128xf32>
    %37 = arith.maximumf %35, %36 : vector<8x128xf32>
    %38 = arith.truncf %37 : vector<8x128xf32> to vector<8x128xbf16>
    %c0_17 = arith.constant 0 : index
    %c0_18 = arith.constant 0 : index
    %39 = vector.load %arg7[%c0_17, %c0_18] : memref<128x128xbf16, #tpu.memory_space<vmem>>, vector<128x128xbf16>
    %cst_19 = arith.constant dense<0.000000e+00> : vector<8x128xf32>
    %40 = tpu.matmul %38, %39, %cst_19 {dimension_numbers = #tpu.dot_dimension_numbers<[1], [0], [0], [1], [0, 0, 1, 1], [], []>} : vector<8x128xbf16>, vector<128x128xbf16>, vector<8x128xf32> -> vector<8x128xf32>
    %c0_20 = arith.constant 0 : index
    %c0_21 = arith.constant 0 : index
    %41 = vector.load %arg8[%c0_20, %c0_21] : memref<1x128xf32, #tpu.memory_space<vmem>>, vector<1x128xf32>
    %42 = vector.broadcast %41 : vector<1x128xf32> to vector<8x128xf32>
    %43 = arith.addf %40, %42 : vector<8x128xf32>
    %44 = arith.truncf %43 : vector<8x128xf32> to vector<8x128xbf16>
    %c0_22 = arith.constant 0 : index
    %c0_23 = arith.constant 0 : index
    %45 = vector.load %arg9[%c0_22, %c0_23] : memref<128x32xbf16, #tpu.memory_space<vmem>>, vector<128x32xbf16>
    %cst_24 = arith.constant dense<0.000000e+00> : vector<8x32xf32>
    %46 = tpu.matmul %44, %45, %cst_24 {dimension_numbers = #tpu.dot_dimension_numbers<[1], [0], [0], [1], [0, 0, 1, 1], [], []>} : vector<8x128xbf16>, vector<128x32xbf16>, vector<8x32xf32> -> vector<8x32xf32>
    %c0_25 = arith.constant 0 : index
    %c0_26 = arith.constant 0 : index
    %47 = vector.load %arg10[%c0_25, %c0_26] : memref<1x32xf32, #tpu.memory_space<vmem>>, vector<1x32xf32>
    %48 = vector.broadcast %47 : vector<1x32xf32> to vector<8x32xf32>
    %49 = arith.addf %46, %48 : vector<8x32xf32>
    %50 = arith.truncf %49 : vector<8x32xf32> to vector<8x32xbf16>
    %c0_27 = arith.constant 0 : index
    %c0_28 = arith.constant 0 : index
    %51 = vector.load %arg11[%c0_27, %c0_28] : memref<32x128xbf16, #tpu.memory_space<vmem>>, vector<32x128xbf16>
    %cst_29 = arith.constant dense<0.000000e+00> : vector<8x128xf32>
    %52 = tpu.matmul %50, %51, %cst_29 {dimension_numbers = #tpu.dot_dimension_numbers<[1], [0], [0], [1], [0, 0, 1, 1], [], []>} : vector<8x32xbf16>, vector<32x128xbf16>, vector<8x128xf32> -> vector<8x128xf32>
    %53 = arith.truncf %52 : vector<8x128xf32> to vector<8x128xbf16>
    %c0_30 = arith.constant 0 : index
    %c0_31 = arith.constant 0 : index
    %54 = vector.load %arg12[%c0_30, %c0_31] : memref<128x4xbf16, #tpu.memory_space<vmem>>, vector<128x4xbf16>
    %cst_32 = arith.constant dense<0.000000e+00> : vector<8x4xf32>
    %55 = tpu.matmul %53, %54, %cst_32 {dimension_numbers = #tpu.dot_dimension_numbers<[1], [0], [0], [1], [0, 0, 1, 1], [], []>} : vector<8x128xbf16>, vector<128x4xbf16>, vector<8x4xf32> -> vector<8x4xf32>
    %c0_33 = arith.constant 0 : index
    %c0_34 = arith.constant 0 : index
    %56 = vector.load %arg13[%c0_33, %c0_34] : memref<4x128xbf16, #tpu.memory_space<vmem>>, vector<4x128xbf16>
    %cst_35 = arith.constant dense<0.000000e+00> : vector<4x8xf32>
    %57 = tpu.matmul %56, %53, %cst_35 {dimension_numbers = #tpu.dot_dimension_numbers<[1], [1], [0], [0], [0, 0, 1, 0], [], []>} : vector<4x128xbf16>, vector<8x128xbf16>, vector<4x8xf32> -> vector<4x8xf32>
    %c0_36 = arith.constant 0 : index
    %c0_37 = arith.constant 0 : index
    %58 = vector.load %arg14[%c0_36, %c0_37] : memref<1x128xf32, #tpu.memory_space<vmem>>, vector<1x128xf32>
    %59 = vector.extract_strided_slice %55 {offsets = [0, 0], sizes = [8, 1], strides = [1, 1]} : vector<8x4xf32> to vector<8x1xf32>
    %60 = vector.extract_strided_slice %57 {offsets = [0, 0], sizes = [1, 8], strides = [1, 1]} : vector<4x8xf32> to vector<1x8xf32>
    %61 = vector.extract_strided_slice %53 {offsets = [0, 0], sizes = [8, 32], strides = [1, 1]} : vector<8x128xbf16> to vector<8x32xbf16>
    %62 = vector.broadcast %59 : vector<8x1xf32> to vector<8x8xf32>
    %63 = vector.broadcast %60 : vector<1x8xf32> to vector<8x8xf32>
    %64 = arith.addf %62, %63 : vector<8x8xf32>
    %cst_38 = arith.constant 0.000000e+00 : f32
    %65 = vector.broadcast %cst_38 : f32 to vector<8x8xf32>
    %66 = arith.cmpf oge, %64, %65 : vector<8x8xf32>
    %cst_39 = arith.constant 2.000000e-01 : f32
    %67 = vector.broadcast %cst_39 : f32 to vector<8x8xf32>
    %68 = arith.mulf %67, %64 : vector<8x8xf32>
    %69 = arith.select %66, %64, %68 : vector<8x8xi1>, vector<8x8xf32>
    %cst_40 = arith.constant -1.000000e+30 : f32
    %70 = vector.broadcast %cst_40 : f32 to vector<8x8xf32>
    %71 = arith.select %6, %69, %70 : vector<8x8xi1>, vector<8x8xf32>
    %cst_41 = arith.constant dense<0xFF800000> : vector<8xf32>
    %72 = vector.multi_reduction <maximumf>, %71, %cst_41 [1] : vector<8x8xf32> to vector<8xf32>
    %73 = vector.shape_cast %72 : vector<8xf32> to vector<8x1xf32>
    %74 = vector.broadcast %73 : vector<8x1xf32> to vector<8x8xf32>
    %75 = arith.subf %71, %74 : vector<8x8xf32>
    %76 = math.exp %75 : vector<8x8xf32>
    %cst_42 = arith.constant dense<0.000000e+00> : vector<8xf32>
    %77 = vector.multi_reduction <add>, %76, %cst_42 [1] : vector<8x8xf32> to vector<8xf32>
    %78 = vector.shape_cast %77 : vector<8xf32> to vector<8x1xf32>
    %79 = tpu.reciprocal %78 {approx = true} : vector<8x1xf32> -> vector<8x1xf32>
    %80 = vector.broadcast %79 : vector<8x1xf32> to vector<8x8xf32>
    %81 = arith.mulf %76, %80 : vector<8x8xf32>
    %82 = arith.truncf %81 : vector<8x8xf32> to vector<8x8xbf16>
    %cst_43 = arith.constant dense<0.000000e+00> : vector<8x32xf32>
    %83 = tpu.matmul %82, %61, %cst_43 {dimension_numbers = #tpu.dot_dimension_numbers<[1], [0], [0], [1], [0, 0, 1, 1], [], []>} : vector<8x8xbf16>, vector<8x32xbf16>, vector<8x32xf32> -> vector<8x32xf32>
    %84 = vector.extract_strided_slice %58 {offsets = [0, 0], sizes = [1, 32], strides = [1, 1]} : vector<1x128xf32> to vector<1x32xf32>
    %85 = vector.broadcast %84 : vector<1x32xf32> to vector<8x32xf32>
    %86 = arith.addf %83, %85 : vector<8x32xf32>
    %cst_44 = arith.constant 0.000000e+00 : f32
    %87 = vector.broadcast %cst_44 : f32 to vector<8x32xf32>
    %88 = arith.maximumf %86, %87 : vector<8x32xf32>
    %c0_45 = arith.constant 0 : index
    %c0_46 = arith.constant 0 : index
    %89 = vector.load %arg20[%c0_45, %c0_46] : memref<8x128xf32, #tpu.memory_space<vmem>>, vector<8x32xf32>
    tpu.vector_store %arg20[%c0_45, %c0_46], %88 {strides = array<i32>} : memref<8x128xf32, #tpu.memory_space<vmem>>, vector<8x32xf32>,
    %90 = vector.extract_strided_slice %55 {offsets = [0, 1], sizes = [8, 1], strides = [1, 1]} : vector<8x4xf32> to vector<8x1xf32>
    %91 = vector.extract_strided_slice %57 {offsets = [1, 0], sizes = [1, 8], strides = [1, 1]} : vector<4x8xf32> to vector<1x8xf32>
    %92 = vector.extract_strided_slice %53 {offsets = [0, 32], sizes = [8, 32], strides = [1, 1]} : vector<8x128xbf16> to vector<8x32xbf16>
    %93 = vector.broadcast %90 : vector<8x1xf32> to vector<8x8xf32>
    %94 = vector.broadcast %91 : vector<1x8xf32> to vector<8x8xf32>
    %95 = arith.addf %93, %94 : vector<8x8xf32>
    %cst_47 = arith.constant 0.000000e+00 : f32
    %96 = vector.broadcast %cst_47 : f32 to vector<8x8xf32>
    %97 = arith.cmpf oge, %95, %96 : vector<8x8xf32>
    %cst_48 = arith.constant 2.000000e-01 : f32
    %98 = vector.broadcast %cst_48 : f32 to vector<8x8xf32>
    %99 = arith.mulf %98, %95 : vector<8x8xf32>
    %100 = arith.select %97, %95, %99 : vector<8x8xi1>, vector<8x8xf32>
    %cst_49 = arith.constant -1.000000e+30 : f32
    %101 = vector.broadcast %cst_49 : f32 to vector<8x8xf32>
    %102 = arith.select %6, %100, %101 : vector<8x8xi1>, vector<8x8xf32>
    %cst_50 = arith.constant dense<0xFF800000> : vector<8xf32>
    %103 = vector.multi_reduction <maximumf>, %102, %cst_50 [1] : vector<8x8xf32> to vector<8xf32>
    %104 = vector.shape_cast %103 : vector<8xf32> to vector<8x1xf32>
    %105 = vector.broadcast %104 : vector<8x1xf32> to vector<8x8xf32>
    %106 = arith.subf %102, %105 : vector<8x8xf32>
    %107 = math.exp %106 : vector<8x8xf32>
    %cst_51 = arith.constant dense<0.000000e+00> : vector<8xf32>
    %108 = vector.multi_reduction <add>, %107, %cst_51 [1] : vector<8x8xf32> to vector<8xf32>
    %109 = vector.shape_cast %108 : vector<8xf32> to vector<8x1xf32>
    %110 = tpu.reciprocal %109 {approx = true} : vector<8x1xf32> -> vector<8x1xf32>
    %111 = vector.broadcast %110 : vector<8x1xf32> to vector<8x8xf32>
    %112 = arith.mulf %107, %111 : vector<8x8xf32>
    %113 = arith.truncf %112 : vector<8x8xf32> to vector<8x8xbf16>
    %cst_52 = arith.constant dense<0.000000e+00> : vector<8x32xf32>
    %114 = tpu.matmul %113, %92, %cst_52 {dimension_numbers = #tpu.dot_dimension_numbers<[1], [0], [0], [1], [0, 0, 1, 1], [], []>} : vector<8x8xbf16>, vector<8x32xbf16>, vector<8x32xf32> -> vector<8x32xf32>
    %115 = vector.extract_strided_slice %58 {offsets = [0, 32], sizes = [1, 32], strides = [1, 1]} : vector<1x128xf32> to vector<1x32xf32>
    %116 = vector.broadcast %115 : vector<1x32xf32> to vector<8x32xf32>
    %117 = arith.addf %114, %116 : vector<8x32xf32>
    %cst_53 = arith.constant 0.000000e+00 : f32
    %118 = vector.broadcast %cst_53 : f32 to vector<8x32xf32>
    %119 = arith.maximumf %117, %118 : vector<8x32xf32>
    %c0_54 = arith.constant 0 : index
    %c32 = arith.constant 32 : index
    %120 = vector.load %arg20[%c0_54, %c32] : memref<8x128xf32, #tpu.memory_space<vmem>>, vector<8x32xf32>
    tpu.vector_store %arg20[%c0_54, %c32], %119 {strides = array<i32>} : memref<8x128xf32, #tpu.memory_space<vmem>>, vector<8x32xf32>,
    %121 = vector.extract_strided_slice %55 {offsets = [0, 2], sizes = [8, 1], strides = [1, 1]} : vector<8x4xf32> to vector<8x1xf32>
    %122 = vector.extract_strided_slice %57 {offsets = [2, 0], sizes = [1, 8], strides = [1, 1]} : vector<4x8xf32> to vector<1x8xf32>
    %123 = vector.extract_strided_slice %53 {offsets = [0, 64], sizes = [8, 32], strides = [1, 1]} : vector<8x128xbf16> to vector<8x32xbf16>
    %124 = vector.broadcast %121 : vector<8x1xf32> to vector<8x8xf32>
    %125 = vector.broadcast %122 : vector<1x8xf32> to vector<8x8xf32>
    %126 = arith.addf %124, %125 : vector<8x8xf32>
    %cst_55 = arith.constant 0.000000e+00 : f32
    %127 = vector.broadcast %cst_55 : f32 to vector<8x8xf32>
    %128 = arith.cmpf oge, %126, %127 : vector<8x8xf32>
    %cst_56 = arith.constant 2.000000e-01 : f32
    %129 = vector.broadcast %cst_56 : f32 to vector<8x8xf32>
    %130 = arith.mulf %129, %126 : vector<8x8xf32>
    %131 = arith.select %128, %126, %130 : vector<8x8xi1>, vector<8x8xf32>
    %cst_57 = arith.constant -1.000000e+30 : f32
    %132 = vector.broadcast %cst_57 : f32 to vector<8x8xf32>
    %133 = arith.select %6, %131, %132 : vector<8x8xi1>, vector<8x8xf32>
    %cst_58 = arith.constant dense<0xFF800000> : vector<8xf32>
    %134 = vector.multi_reduction <maximumf>, %133, %cst_58 [1] : vector<8x8xf32> to vector<8xf32>
    %135 = vector.shape_cast %134 : vector<8xf32> to vector<8x1xf32>
    %136 = vector.broadcast %135 : vector<8x1xf32> to vector<8x8xf32>
    %137 = arith.subf %133, %136 : vector<8x8xf32>
    %138 = math.exp %137 : vector<8x8xf32>
    %cst_59 = arith.constant dense<0.000000e+00> : vector<8xf32>
    %139 = vector.multi_reduction <add>, %138, %cst_59 [1] : vector<8x8xf32> to vector<8xf32>
    %140 = vector.shape_cast %139 : vector<8xf32> to vector<8x1xf32>
    %141 = tpu.reciprocal %140 {approx = true} : vector<8x1xf32> -> vector<8x1xf32>
    %142 = vector.broadcast %141 : vector<8x1xf32> to vector<8x8xf32>
    %143 = arith.mulf %138, %142 : vector<8x8xf32>
    %144 = arith.truncf %143 : vector<8x8xf32> to vector<8x8xbf16>
    %cst_60 = arith.constant dense<0.000000e+00> : vector<8x32xf32>
    %145 = tpu.matmul %144, %123, %cst_60 {dimension_numbers = #tpu.dot_dimension_numbers<[1], [0], [0], [1], [0, 0, 1, 1], [], []>} : vector<8x8xbf16>, vector<8x32xbf16>, vector<8x32xf32> -> vector<8x32xf32>
    %146 = vector.extract_strided_slice %58 {offsets = [0, 64], sizes = [1, 32], strides = [1, 1]} : vector<1x128xf32> to vector<1x32xf32>
    %147 = vector.broadcast %146 : vector<1x32xf32> to vector<8x32xf32>
    %148 = arith.addf %145, %147 : vector<8x32xf32>
    %cst_61 = arith.constant 0.000000e+00 : f32
    %149 = vector.broadcast %cst_61 : f32 to vector<8x32xf32>
    %150 = arith.maximumf %148, %149 : vector<8x32xf32>
    %c0_62 = arith.constant 0 : index
    %c64 = arith.constant 64 : index
    %151 = vector.load %arg20[%c0_62, %c64] : memref<8x128xf32, #tpu.memory_space<vmem>>, vector<8x32xf32>
    tpu.vector_store %arg20[%c0_62, %c64], %150 {strides = array<i32>} : memref<8x128xf32, #tpu.memory_space<vmem>>, vector<8x32xf32>,
    %152 = vector.extract_strided_slice %55 {offsets = [0, 3], sizes = [8, 1], strides = [1, 1]} : vector<8x4xf32> to vector<8x1xf32>
    %153 = vector.extract_strided_slice %57 {offsets = [3, 0], sizes = [1, 8], strides = [1, 1]} : vector<4x8xf32> to vector<1x8xf32>
    %154 = vector.extract_strided_slice %53 {offsets = [0, 96], sizes = [8, 32], strides = [1, 1]} : vector<8x128xbf16> to vector<8x32xbf16>
    %155 = vector.broadcast %152 : vector<8x1xf32> to vector<8x8xf32>
    %156 = vector.broadcast %153 : vector<1x8xf32> to vector<8x8xf32>
    %157 = arith.addf %155, %156 : vector<8x8xf32>
    %cst_63 = arith.constant 0.000000e+00 : f32
    %158 = vector.broadcast %cst_63 : f32 to vector<8x8xf32>
    %159 = arith.cmpf oge, %157, %158 : vector<8x8xf32>
    %cst_64 = arith.constant 2.000000e-01 : f32
    %160 = vector.broadcast %cst_64 : f32 to vector<8x8xf32>
    %161 = arith.mulf %160, %157 : vector<8x8xf32>
    %162 = arith.select %159, %157, %161 : vector<8x8xi1>, vector<8x8xf32>
    %cst_65 = arith.constant -1.000000e+30 : f32
    %163 = vector.broadcast %cst_65 : f32 to vector<8x8xf32>
    %164 = arith.select %6, %162, %163 : vector<8x8xi1>, vector<8x8xf32>
    %cst_66 = arith.constant dense<0xFF800000> : vector<8xf32>
    %165 = vector.multi_reduction <maximumf>, %164, %cst_66 [1] : vector<8x8xf32> to vector<8xf32>
    %166 = vector.shape_cast %165 : vector<8xf32> to vector<8x1xf32>
    %167 = vector.broadcast %166 : vector<8x1xf32> to vector<8x8xf32>
    %168 = arith.subf %164, %167 : vector<8x8xf32>
    %169 = math.exp %168 : vector<8x8xf32>
    %cst_67 = arith.constant dense<0.000000e+00> : vector<8xf32>
    %170 = vector.multi_reduction <add>, %169, %cst_67 [1] : vector<8x8xf32> to vector<8xf32>
    %171 = vector.shape_cast %170 : vector<8xf32> to vector<8x1xf32>
    %172 = tpu.reciprocal %171 {approx = true} : vector<8x1xf32> -> vector<8x1xf32>
    %173 = vector.broadcast %172 : vector<8x1xf32> to vector<8x8xf32>
    %174 = arith.mulf %169, %173 : vector<8x8xf32>
    %175 = arith.truncf %174 : vector<8x8xf32> to vector<8x8xbf16>
    %cst_68 = arith.constant dense<0.000000e+00> : vector<8x32xf32>
    %176 = tpu.matmul %175, %154, %cst_68 {dimension_numbers = #tpu.dot_dimension_numbers<[1], [0], [0], [1], [0, 0, 1, 1], [], []>} : vector<8x8xbf16>, vector<8x32xbf16>, vector<8x32xf32> -> vector<8x32xf32>
    %177 = vector.extract_strided_slice %58 {offsets = [0, 96], sizes = [1, 32], strides = [1, 1]} : vector<1x128xf32> to vector<1x32xf32>
    %178 = vector.broadcast %177 : vector<1x32xf32> to vector<8x32xf32>
    %179 = arith.addf %176, %178 : vector<8x32xf32>
    %cst_69 = arith.constant 0.000000e+00 : f32
    %180 = vector.broadcast %cst_69 : f32 to vector<8x32xf32>
    %181 = arith.maximumf %179, %180 : vector<8x32xf32>
    %c0_70 = arith.constant 0 : index
    %c96 = arith.constant 96 : index
    %182 = vector.load %arg20[%c0_70, %c96] : memref<8x128xf32, #tpu.memory_space<vmem>>, vector<8x32xf32>
    tpu.vector_store %arg20[%c0_70, %c96], %181 {strides = array<i32>} : memref<8x128xf32, #tpu.memory_space<vmem>>, vector<8x32xf32>,
    %c0_71 = arith.constant 0 : index
    %c0_72 = arith.constant 0 : index
    %183 = vector.load %arg20[%c0_71, %c0_72] : memref<8x128xf32, #tpu.memory_space<vmem>>, vector<8x128xf32>
    %184 = arith.truncf %183 : vector<8x128xf32> to vector<8x128xbf16>
    %c0_73 = arith.constant 0 : index
    %c0_74 = arith.constant 0 : index
    %185 = vector.load %arg15[%c0_73, %c0_74] : memref<128x128xbf16, #tpu.memory_space<vmem>>, vector<128x128xbf16>
    %cst_75 = arith.constant dense<0.000000e+00> : vector<8x128xf32>
    %186 = tpu.matmul %184, %185, %cst_75 {dimension_numbers = #tpu.dot_dimension_numbers<[1], [0], [0], [1], [0, 0, 1, 1], [], []>} : vector<8x128xbf16>, vector<128x128xbf16>, vector<8x128xf32> -> vector<8x128xf32>
    %187 = arith.truncf %186 : vector<8x128xf32> to vector<8x128xbf16>
    %c0_76 = arith.constant 0 : index
    %c0_77 = arith.constant 0 : index
    %188 = vector.load %arg16[%c0_76, %c0_77] : memref<128x1xbf16, #tpu.memory_space<vmem>>, vector<128x1xbf16>
    %cst_78 = arith.constant dense<0.000000e+00> : vector<8x1xf32>
    %189 = tpu.matmul %187, %188, %cst_78 {dimension_numbers = #tpu.dot_dimension_numbers<[1], [0], [0], [1], [0, 0, 1, 1], [], []>} : vector<8x128xbf16>, vector<128x1xbf16>, vector<8x1xf32> -> vector<8x1xf32>
    %c0_79 = arith.constant 0 : index
    %c0_80 = arith.constant 0 : index
    %190 = vector.load %arg17[%c0_79, %c0_80] : memref<1x128xbf16, #tpu.memory_space<vmem>>, vector<1x128xbf16>
    %cst_81 = arith.constant dense<0.000000e+00> : vector<1x8xf32>
    %191 = tpu.matmul %190, %187, %cst_81 {dimension_numbers = #tpu.dot_dimension_numbers<[1], [1], [0], [0], [0, 0, 1, 0], [], []>} : vector<1x128xbf16>, vector<8x128xbf16>, vector<1x8xf32> -> vector<1x8xf32>
    %192 = vector.broadcast %189 : vector<8x1xf32> to vector<8x8xf32>
    %193 = vector.broadcast %191 : vector<1x8xf32> to vector<8x8xf32>
    %194 = arith.addf %192, %193 : vector<8x8xf32>
    %cst_82 = arith.constant 0.000000e+00 : f32
    %195 = vector.broadcast %cst_82 : f32 to vector<8x8xf32>
    %196 = arith.cmpf oge, %194, %195 : vector<8x8xf32>
    %cst_83 = arith.constant 2.000000e-01 : f32
    %197 = vector.broadcast %cst_83 : f32 to vector<8x8xf32>
    %198 = arith.mulf %197, %194 : vector<8x8xf32>
    %199 = arith.select %196, %194, %198 : vector<8x8xi1>, vector<8x8xf32>
    %cst_84 = arith.constant -1.000000e+30 : f32
    %200 = vector.broadcast %cst_84 : f32 to vector<8x8xf32>
    %201 = arith.select %6, %199, %200 : vector<8x8xi1>, vector<8x8xf32>
    %cst_85 = arith.constant dense<0xFF800000> : vector<8xf32>
    %202 = vector.multi_reduction <maximumf>, %201, %cst_85 [1] : vector<8x8xf32> to vector<8xf32>
    %203 = vector.shape_cast %202 : vector<8xf32> to vector<8x1xf32>
    %204 = vector.broadcast %203 : vector<8x1xf32> to vector<8x8xf32>
    %205 = arith.subf %201, %204 : vector<8x8xf32>
    %206 = math.exp %205 : vector<8x8xf32>
    %cst_86 = arith.constant dense<0.000000e+00> : vector<8xf32>
    %207 = vector.multi_reduction <add>, %206, %cst_86 [1] : vector<8x8xf32> to vector<8xf32>
    %208 = vector.shape_cast %207 : vector<8xf32> to vector<8x1xf32>
    %209 = tpu.reciprocal %208 {approx = true} : vector<8x1xf32> -> vector<8x1xf32>
    %210 = vector.broadcast %209 : vector<8x1xf32> to vector<8x8xf32>
    %211 = arith.mulf %206, %210 : vector<8x8xf32>
    %212 = arith.truncf %211 : vector<8x8xf32> to vector<8x8xbf16>
    %cst_87 = arith.constant dense<0.000000e+00> : vector<8x128xf32>
    %213 = tpu.matmul %212, %187, %cst_87 {dimension_numbers = #tpu.dot_dimension_numbers<[1], [0], [0], [1], [0, 0, 1, 1], [], []>} : vector<8x8xbf16>, vector<8x128xbf16>, vector<8x128xf32> -> vector<8x128xf32>
    %c0_88 = arith.constant 0 : index
    %c0_89 = arith.constant 0 : index
    %214 = vector.load %arg18[%c0_88, %c0_89] : memref<1x128xf32, #tpu.memory_space<vmem>>, vector<1x128xf32>
    %215 = vector.broadcast %214 : vector<1x128xf32> to vector<8x128xf32>
    %216 = arith.addf %213, %215 : vector<8x128xf32>
    %217 = tpu.iota {dimensions = array<i32: 1>} : vector<8x128xi32>
    %c4_i32 = arith.constant 4 : i32
    %218 = vector.broadcast %c4_i32 : i32 to vector<8x128xi32>
    %219 = arith.cmpi slt, %217, %218 : vector<8x128xi32>
    %cst_90 = arith.constant -1.000000e+30 : f32
    %220 = vector.broadcast %cst_90 : f32 to vector<8x128xf32>
    %221 = arith.select %219, %216, %220 : vector<8x128xi1>, vector<8x128xf32>
    %cst_91 = arith.constant dense<0xFF800000> : vector<8xf32>
    %222 = vector.multi_reduction <maximumf>, %221, %cst_91 [1] : vector<8x128xf32> to vector<8xf32>
    %223 = vector.shape_cast %222 : vector<8xf32> to vector<8x1xf32>
    %224 = vector.broadcast %223 : vector<8x1xf32> to vector<8x128xf32>
    %225 = arith.subf %221, %224 : vector<8x128xf32>
    %226 = math.exp %225 : vector<8x128xf32>
    %cst_92 = arith.constant dense<0.000000e+00> : vector<8xf32>
    %227 = vector.multi_reduction <add>, %226, %cst_92 [1] : vector<8x128xf32> to vector<8xf32>
    %228 = vector.shape_cast %227 : vector<8xf32> to vector<8x1xf32>
    %229 = math.log %228 : vector<8x1xf32>
    %230 = vector.broadcast %229 : vector<8x1xf32> to vector<8x128xf32>
    %231 = arith.subf %225, %230 : vector<8x128xf32>
    %c0_93 = arith.constant 0 : index
    %c0_94 = arith.constant 0 : index
    %232 = vector.load %arg19[%c0_93, %c0_94] : memref<8x128xf32, #tpu.memory_space<vmem>>, vector<8x128xf32>
    tpu.vector_store %arg19[%c0_93, %c0_94], %231 {strides = array<i32>} : memref<8x128xf32, #tpu.memory_space<vmem>>, vector<8x128xf32>,
    return
  }
  func.func @transform_0(%arg0: i32) -> (i32, i32) {
    %c0_i32 = arith.constant 0 : i32
    %c0_i32_0 = arith.constant 0 : i32
    %c0_i32_1 = arith.constant 0 : i32
    return %c0_i32, %c0_i32_0 : i32, i32
  }
  func.func @transform_1(%arg0: i32) -> (i32, i32) {
    %c0_i32 = arith.constant 0 : i32
    %c0_i32_0 = arith.constant 0 : i32
    %c0_i32_1 = arith.constant 0 : i32
    return %c0_i32, %c0_i32_0 : i32, i32
  }
  func.func @transform_2(%arg0: i32) -> (i32, i32) {
    %c0_i32 = arith.constant 0 : i32
    %c0_i32_0 = arith.constant 0 : i32
    %c0_i32_1 = arith.constant 0 : i32
    return %c0_i32, %c0_i32_0 : i32, i32
  }
  func.func @transform_3(%arg0: i32) -> (i32, i32) {
    %c0_i32 = arith.constant 0 : i32
    %c0_i32_0 = arith.constant 0 : i32
    %c0_i32_1 = arith.constant 0 : i32
    return %c0_i32, %c0_i32_0 : i32, i32
  }
  func.func @transform_4(%arg0: i32) -> (i32, i32) {
    %c0_i32 = arith.constant 0 : i32
    %c0_i32_0 = arith.constant 0 : i32
    %c0_i32_1 = arith.constant 0 : i32
    return %c0_i32, %c0_i32_0 : i32, i32
  }
  func.func @transform_5(%arg0: i32) -> (i32, i32) {
    %c0_i32 = arith.constant 0 : i32
    %c0_i32_0 = arith.constant 0 : i32
    %c0_i32_1 = arith.constant 0 : i32
    return %c0_i32, %c0_i32_0 : i32, i32
  }
  func.func @transform_6(%arg0: i32) -> (i32, i32) {
    %c0_i32 = arith.constant 0 : i32
    %c0_i32_0 = arith.constant 0 : i32
    %c0_i32_1 = arith.constant 0 : i32
    return %c0_i32, %c0_i32_0 : i32, i32
  }
  func.func @transform_7(%arg0: i32) -> (i32, i32) {
    %c0_i32 = arith.constant 0 : i32
    %c0_i32_0 = arith.constant 0 : i32
    %c0_i32_1 = arith.constant 0 : i32
    return %c0_i32, %c0_i32_0 : i32, i32
  }
  func.func @transform_8(%arg0: i32) -> (i32, i32) {
    %c0_i32 = arith.constant 0 : i32
    %c0_i32_0 = arith.constant 0 : i32
    %c0_i32_1 = arith.constant 0 : i32
    return %c0_i32, %c0_i32_0 : i32, i32
  }
  func.func @transform_9(%arg0: i32) -> (i32, i32) {
    %c0_i32 = arith.constant 0 : i32
    %c0_i32_0 = arith.constant 0 : i32
    %c0_i32_1 = arith.constant 0 : i32
    return %c0_i32, %c0_i32_0 : i32, i32
  }
  func.func @transform_10(%arg0: i32) -> (i32, i32) {
    %c0_i32 = arith.constant 0 : i32
    %c0_i32_0 = arith.constant 0 : i32
    %c0_i32_1 = arith.constant 0 : i32
    return %c0_i32, %c0_i32_0 : i32, i32
  }
  func.func @transform_11(%arg0: i32) -> (i32, i32) {
    %c0_i32 = arith.constant 0 : i32
    %c0_i32_0 = arith.constant 0 : i32
    %c0_i32_1 = arith.constant 0 : i32
    return %c0_i32, %c0_i32_0 : i32, i32
  }
  func.func @transform_12(%arg0: i32) -> (i32, i32) {
    %c0_i32 = arith.constant 0 : i32
    %c0_i32_0 = arith.constant 0 : i32
    %c0_i32_1 = arith.constant 0 : i32
    return %c0_i32, %c0_i32_0 : i32, i32
  }
  func.func @transform_13(%arg0: i32) -> (i32, i32) {
    %c0_i32 = arith.constant 0 : i32
    %c0_i32_0 = arith.constant 0 : i32
    %c0_i32_1 = arith.constant 0 : i32
    return %c0_i32, %c0_i32_0 : i32, i32
  }
  func.func @transform_14(%arg0: i32) -> (i32, i32) {
    %c0_i32 = arith.constant 0 : i32
    %c0_i32_0 = arith.constant 0 : i32
    %c0_i32_1 = arith.constant 0 : i32
    return %c0_i32, %c0_i32_0 : i32, i32
  }
  func.func @transform_15(%arg0: i32) -> (i32, i32) {
    %c0_i32 = arith.constant 0 : i32
    %c0_i32_0 = arith.constant 0 : i32
    %c0_i32_1 = arith.constant 0 : i32
    return %c0_i32, %c0_i32_0 : i32, i32
  }
  func.func @transform_16(%arg0: i32) -> (i32, i32) {
    %c0_i32 = arith.constant 0 : i32
    %c0_i32_0 = arith.constant 0 : i32
    %c0_i32_1 = arith.constant 0 : i32
    return %c0_i32, %c0_i32_0 : i32, i32
  }
  func.func @transform_17(%arg0: i32) -> (i32, i32) {
    %c0_i32 = arith.constant 0 : i32
    %c0_i32_0 = arith.constant 0 : i32
    %c0_i32_1 = arith.constant 0 : i32
    return %c0_i32, %c0_i32_0 : i32, i32
  }
  func.func @transform_18(%arg0: i32) -> (i32, i32) {
    %c0_i32 = arith.constant 0 : i32
    %c0_i32_0 = arith.constant 0 : i32
    %c0_i32_1 = arith.constant 0 : i32
    return %c0_i32, %c0_i32_0 : i32, i32
  }
}

</mosaic_0001>

<bundles_post_ra>
// kernel: mul.5
= control target key start
LH: loop header
LB: loop body
LE: loop exit
PB: predicated region body
PF: predicated region fallthrough
CT: control target
= control target key end

     0   :  { %s37_s8 = smov 32   ;;  %s38_s9 = smov 64   ;;  %vm7_vm0 = vcmask 261120   ;;  %vm13_vm1 = vcmask 1048320   ;;  %vm19_vm2 = vcmask 785920   ;;  %vm25_vm3 = vcmask 523520   ;;  %s55_s0 = inlined_call_operand.vmem [shape: f32[4,32], index: 0, kind: input, shape index: {}]   ;;  %s56_s1 = inlined_call_operand.vmem [shape: f32[128], index: 1, kind: output, shape index: {}]  }
   0x1   :  { %v4_v0 = vld [vmem:[%s55_s0] sm:$0xf]  ;;  %s36_s0 = smov 96  }
   0x2   :  { %5 = vst [vmem:[#allocation1] sm:$0xf] %v4_v0 }
   0x9   :  { %v10_v1 = vld [vmem:[#allocation1 + $0x3] sm:$0x1]   ;;  %v22_v2 = vld [vmem:[#allocation1 + $0x1] sm:$0x1]   ;;  %v16_v3 = vld [vmem:[#allocation1 + $0x2] sm:$0x1]  }
   0xa   :  { %11 = vrot.lane.b32.xlu0 %v10_v1, %s36_s0  ;;  %23 = vrot.lane.b32.xlu1 %v22_v2, %s37_s8  ;;  %v6_v4 = vld [vmem:[#allocation1] sm:$0x1]  }
   0xb   :  { %8 = vst.msk [vmem:[#allocation0] sm:$0x1] %vm7_vm0, %v6_v4  }
  0x12   :  { %17 = vrot.lane.b32.xlu0 %v16_v3, %s38_s9 }
  0x7c   :  { %v12_v5 = vpop.permute.xlu0 %11   ;;  %v24_v6 = vpop.permute.xlu1 %23  }
  0x7d   :  { %14 = vst.msk [vmem:[#allocation0] sm:$0x1] %vm13_vm1, %v12_v5  }
  0x84   :  { %v18_v7 = vpop.permute.xlu0 %17  }
  0x85   :  { %20 = vst.msk [vmem:[#allocation0] sm:$0x1] %vm19_vm2, %v18_v7  }
  0x86   :  { %26 = vst.msk [vmem:[#allocation0] sm:$0x1] %vm25_vm3, %v24_v6  }
  0x8d   :  { %v29_v8 = vld [vmem:[#allocation0] sm:$0x1] }
  0x8e   :  { %32 = vst [vmem:[%s56_s1] sm:$0x1] %v29_v8 }

// kernel: ddgat_forward.1
= control target key start
LH: loop header
LB: loop body
LE: loop exit
PB: predicated region body
PF: predicated region fallthrough
CT: control target
= control target key end

     0   :  { %vm83_vm0 = vcmask 130048   ;;  %vm105_vm1 = vcmask 1043456   ;;  %vm101_vm2 = vcmask 64512   ;;  %v61_v10 = vlaneseq  ;;  %s1649_s2 = inlined_call_operand.vmem [shape: bf16[16,128], index: 2, kind: input, shape index: {}]   ;;  %s1650_s0 = inlined_call_operand.vmem [shape: f32[8,16], index: 0, kind: input, shape index: {}]   ;;  %s1651_s3 = inlined_call_operand.vmem [shape: f32[1,128], index: 3, kind: input, shape index: {}]   ;;  %s1652_s1 = inlined_call_operand.vmem [shape: bf16[8,8], index: 1, kind: input, shape index: {}]   ;;  %s1653_s4 = inlined_call_operand.vmem [shape: bf16[128,128], index: 4, kind: input, shape index: {}]   ;;  %s1654_s5 = inlined_call_operand.vmem [shape: f32[1,128], index: 5, kind: input, shape index: {}]   ;;  %s1655_s6 = inlined_call_operand.vmem [shape: bf16[128,128], index: 6, kind: input, shape index: {}]   ;;  %s1656_s7 = inlined_call_operand.vmem [shape: f32[1,128], index: 7, kind: input, shape index: {}]   ;;  %s1657_s8 = inlined_call_operand.vmem [shape: bf16[128,32], index: 8, kind: input, shape index: {}]   ;;  %s1658_s9 = inlined_call_operand.vmem [shape: f32[1,32], index: 9, kind: input, shape index: {}]   ;;  %s1659_s10 = inlined_call_operand.vmem [shape: bf16[32,128], index: 10, kind: input, shape index: {}]   ;;  %s1660_s11 = inlined_call_operand.vmem [shape: bf16[128,4], index: 11, kind: input, shape index: {}]   ;;  %s1661_s12 = inlined_call_operand.vmem [shape: bf16[4,128], index: 12, kind: input, shape index: {}]   ;;  %s1662_s13 = inlined_call_operand.vmem [shape: f32[1,128], index: 13, kind: input, shape index: {}]   ;;  %s1663_s14 = inlined_call_operand.vmem [shape: bf16[128,128], index: 14, kind: input, shape index: {}]   ;;  %s1664_s15 = inlined_call_operand.vmem [shape: bf16[128,1], index: 15, kind: input, shape index: {}]   ;;  %s1665_s16 = inlined_call_operand.vmem [shape: bf16[1,128], index: 16, kind: input, shape index: {}]   ;;  %s1666_s17 = inlined_call_operand.vmem [shape: f32[1,128], index: 17, kind: input, shape index: {}]   ;;  %s1667_s18 = inlined_call_operand.vmem [shape: f32[8,128], index: 18, kind: output, shape index: {}]  }
   0x1   :  { %1668 = sst [smem:[#allocation3_spill]] %s1649_s2  ;;  %v1404_v8 = vld [vmem:[%s1652_s1] sm:$0xf]  ;;  %v1204_v17 = vld [vmem:[%s1653_s4 + $0x38] sm:$0xff]  ;;  %v1203_v18 = vld [vmem:[%s1653_s4 + $0x30] sm:$0xff]  ;;  %vm429_vm9 = vcmask 261120  }
   0x2   :  { %1669 = sst [smem:[#allocation4_spill]] %s1650_s0  ;;  %v1409_v11 = vand.u32 127, %v61_v10  ;;  %v1202_v19 = vld [vmem:[%s1653_s4 + $0x28] sm:$0xff]  ;;  %v1201_v20 = vld [vmem:[%s1653_s4 + $0x20] sm:$0xff]  ;;  %v1200_v21 = vld [vmem:[%s1653_s4 + $0x18] sm:$0xff] }
   0x3   :  { %1670 = sst [smem:[#allocation5_spill]] %s1651_s3  ;;  %v1199_v22 = vld [vmem:[%s1653_s4 + $0x10] sm:$0xff]  ;;  %v1198_v23 = vld [vmem:[%s1653_s4 + $0x8] sm:$0xff]  ;;  %v1197_v29 = vld [vmem:[%s1653_s4] sm:$0xff] }
   0x4   :  { %1671 = sst [smem:[#allocation6_spill]] %s1662_s13  ;;  %vm122_vm3 = vcmp.ge.s32.totalorder %v1409_v11, 32  ;;  %vm142_vm5 = vcmp.ge.s32.totalorder %v1409_v11, 64  ;;  %v1212_v30 = vld [vmem:[%s1655_s6 + $0x38] sm:$0xff]  ;;  %v1211_v31 = vld [vmem:[%s1655_s6 + $0x30] sm:$0xff]  ;;  %v1210_v32 = vld [vmem:[%s1655_s6 + $0x28] sm:$0xff] }
   0x5   :  { %s1672_s29 = sld [smem:[#allocation3_spill]]  ;;  %vm124_vm4 = vmpackc.low %vm122_vm3, %vm122_vm3  ;;  %v1209_v33 = vld [vmem:[%s1655_s6 + $0x20] sm:$0xff]  ;;  %v1208_v34 = vld [vmem:[%s1655_s6 + $0x18] sm:$0xff]  ;;  %vm162_vm7 = vcmp.ge.s32.totalorder %v1409_v11, 96  ;;  %vm640_vm3 = vcmask 523520  }
   0x6   :  { %s1673_s13 = sld [smem:[#allocation4_spill]]  ;;  %vm144_vm6 = vmpackc.low %vm142_vm5, %vm142_vm5  ;;  %v1207_v35 = vld [vmem:[%s1655_s6 + $0x10] sm:$0xff]  ;;  %v1206_v40 = vld [vmem:[%s1655_s6 + $0x8] sm:$0xff]  ;;  %vm746_vm5 = vcmask 1048320  }
   0x7   :  { %s1674_s20 = sld [smem:[#allocation5_spill]]  ;;  %vm164_vm8 = vmpackc.low %vm162_vm7, %vm162_vm7  ;;  %v1205_v41 = vld [vmem:[%s1655_s6] sm:$0xff]  ;;  %v1220_v42 = vld [vmem:[%s1657_s8 + $0x38] sm:$0xff] }
   0x8   :  { %v1219_v43 = vld [vmem:[%s1657_s8 + $0x30] sm:$0xff]  ;;  %v1218_v44 = vld [vmem:[%s1657_s8 + $0x28] sm:$0xff]  ;;  %v1217_v45 = vld [vmem:[%s1657_s8 + $0x20] sm:$0xff]  ;;  %s1677_s1 = sld [smem:[#allocation6_spill]] }
   0x9   :  { %v1216_v46 = vld [vmem:[%s1657_s8 + $0x18] sm:$0xff]  ;;  %v1215_v47 = vld [vmem:[%s1657_s8 + $0x10] sm:$0xff]  ;;  %v1260_v48 = vld [vmem:[%s1654_s5] ss:$0 sm:$0xff]  ;;  %s1295_s5 = smov 64  }
   0xa   :  { %v1214_v49 = vld [vmem:[%s1657_s8 + $0x8] sm:$0xff]  ;;  %v1213_v55 = vld [vmem:[%s1657_s8] sm:$0xff]  ;;  %v1230_v63 = vld [vmem:[%s1660_s11 + $0x38] sm:$0xff] }
   0xb   :  { %v1196_v0 = vld [vmem:[%s1672_s29] sm:$0xff]  ;;  %v1222_v56 = vld [vmem:[%s1659_s10 + $0x8] sm:$0xff] }
   0xc   :  { %v69_v1 = vld [vmem:[%s1673_s13] sm:$0xff]  ;;  %94 = vmatpush.bf16.msra.mxu0 %v1196_v0  ;;  %v1229_v0 = vld [vmem:[%s1660_s11 + $0x30] sm:$0xff] }
   0xd   :  { %v70_v2 = vpack.c.bf16 %v69_v1, %v69_v1  ;;  %v1259_v3 = vld [vmem:[%s1674_s20] ss:$0 sm:$0xff]  ;;  %v1228_v1 = vld [vmem:[%s1660_s11 + $0x28] sm:$0xff] }
   0xe   :  { %v1261_v57 = vld [vmem:[%s1656_s7] ss:$0 sm:$0xff] }
   0xf   :  { %986 = vmatmul.msk.bf16.vlgmr.msra.gmra.mxu0 %vm83_vm0, %v70_v2  ;;  %v1221_v62 = vld [vmem:[%s1659_s10] sm:$0xff] }
  0x10   :  { %234 = vmatpush.bf16.msrb.mxu0 %v1204_v17  ;;  %v1227_v2 = vld [vmem:[%s1660_s11 + $0x20] sm:$0xff] }
  0x14   :  { %235 = vmatpush.bf16.msrb.mxu0 %v1203_v18 }
  0x18   :  { %236 = vmatpush.bf16.msrb.mxu0 %v1202_v19 }
  0x1c   :  { %237 = vmatpush.bf16.msrb.mxu0 %v1201_v20  ;;  %v524_v20 = vld [vmem:[%s1661_s12] sm:$0x3]  ;;  %s1294_s12 = smov 32  }
  0x20   :  { %238 = vmatpush.bf16.msrb.mxu0 %v1200_v21 }
  0x24   :  { %239 = vmatpush.bf16.msrb.mxu0 %v1199_v22 }
  0x28   :  { %240 = vmatpush.bf16.msrb.mxu0 %v1198_v23 }
  0x2c   :  { %241 = vmatpush.bf16.msrb.mxu0 %v1197_v29  ;;  %v62_v29 = vshrl.u32 %v61_v10, 7 }
  0x2e   :  { %vm67_vm11 = vcmp.eq.s32.totalorder %v62_v29, %v1409_v11 }
  0x8c   :  { %v96_v4 = vpop.f32.mrf.mxu0 }
  0x8d   :  { %v97_v5 = vadd.f32 %v1259_v3, %v96_v4  ;;  %v1226_v3 = vld [vmem:[%s1660_s11 + $0x18] sm:$0xff]  ;;  %v1225_v4 = vld [vmem:[%s1660_s11 + $0x10] sm:$0xff] }
  0x8f   :  { %v100_v6 = vpack.c.bf16 %v97_v5, %v97_v5  ;;  %v1262_v5 = vld [vmem:[%s1658_s9] ss:$0 sm:$0xff] }
  0x91   :  { %v107_v7 = vsel %vm105_vm1, %v100_v6, 0 }
  0x92   :  { %116 = vmatpush.bf16.msra.mxu1 %v107_v7 }
  0x94   :  { %v98_v9 = vpop.f32.mrf.mxu0 }
  0x95   :  { %987 = vmatmul.msk.bf16.vlgmr.msra.gmra.mxu1 %vm101_vm2, %v1404_v8 }
  0x96   :  { %317 = vmatpush.bf16.msrb.mxu1 %v1212_v30 }
  0x9a   :  { %318 = vmatpush.bf16.msrb.mxu1 %v1211_v31 }
  0x9e   :  { %319 = vmatpush.bf16.msrb.mxu1 %v1210_v32 }
  0xa2   :  { %320 = vmatpush.bf16.msrb.mxu1 %v1209_v33 }
  0xa6   :  { %321 = vmatpush.bf16.msrb.mxu1 %v1208_v34 }
  0xaa   :  { %322 = vmatpush.bf16.msrb.mxu1 %v1207_v35 }
  0xae   :  { %323 = vmatpush.bf16.msrb.mxu1 %v1206_v40 }
  0xb2   :  { %324 = vmatpush.bf16.msrb.mxu1 %v1205_v41 }
 0x112   :  { %v118_v12 = vpop.f32.mrf.mxu1 }
 0x113   :  { %v123_v13 = vpack.c.bf16 %v118_v12, %v118_v12 }
 0x115   :  { %v125_v14 = vsel %vm124_vm4, %v123_v13, %v100_v6  ;;  %v1224_v6 = vld [vmem:[%s1660_s11 + $0x8] sm:$0xff]  ;;  %vm693_vm4 = vcmask 785920  }
 0x116   :  { %v127_v15 = vsel %vm105_vm1, %v125_v14, 0 }
 0x117   :  { %136 = vmatpush.bf16.msra.mxu2 %v127_v15  ;;  %v1289_v15 = vmov 2  }
 0x118   :  { %1256 = vset.pattern.permute.xlu1 %v1289_v15 }
 0x11a   :  { %v120_v16 = vpop.f32.mrf.mxu1  ;;  %988 = vmatmul.msk.bf16.vlgmr.msra.gmra.mxu2 %vm101_vm2, %v1404_v8 }
 0x11b   :  { %399 = vmatpush.bf16.msrb.mxu2 %v1220_v42  ;;  %v1290_v16 = vmov 0  }
 0x11c   :  { %1254 = vset.pattern.permute.xlu0 %v1290_v16 }
 0x11f   :  { %400 = vmatpush.bf16.msrb.mxu2 %v1219_v43 }
 0x123   :  { %401 = vmatpush.bf16.msrb.mxu2 %v1218_v44 }
 0x127   :  { %402 = vmatpush.bf16.msrb.mxu2 %v1217_v45 }
 0x12b   :  { %403 = vmatpush.bf16.msrb.mxu2 %v1216_v46 }
 0x12f   :  { %404 = vmatpush.bf16.msrb.mxu2 %v1215_v47 }
 0x133   :  { %405 = vmatpush.bf16.msrb.mxu2 %v1214_v49 }
 0x137   :  { %406 = vmatpush.bf16.msrb.mxu2 %v1213_v55 }
 0x19d   :  { %v138_v24 = vpop.f32.mrf.mxu2 }
 0x19e   :  { %v143_v25 = vpack.c.bf16 %v138_v24, %v138_v24 }
 0x1a0   :  { %v145_v26 = vsel %vm144_vm6, %v143_v25, %v125_v14  ;;  %v1223_v14 = vld [vmem:[%s1660_s11] sm:$0xff]  ;;  %v1291_v25 = vmov 3   ;;  %s1293_s11 = smov 96  }
 0x1a1   :  { %v147_v27 = vsel %vm105_vm1, %v145_v26, 0 }
 0x1a2   :  { %156 = vmatpush.bf16.msra.mxu3 %v147_v27 }
 0x1a5   :  { %v140_v28 = vpop.f32.mrf.mxu2  ;;  %989 = vmatmul.msk.bf16.vlgmr.msra.gmra.mxu3 %vm101_vm2, %v1404_v8 }
 0x1a6   :  { %439 = vmatpush.bf16.msrb.mxu3 %v1222_v56  ;;  %v65_v28 = vunpack.c.l.bf16 %v1404_v8 }
 0x1a8   :  { %vm66_vm10 = vcmp.gt.f32.partialorder %v65_v28, 0.0 }
 0x1a9   :  { %vm1544_vm12 = vmor %vm66_vm10, %vm67_vm11 }
 0x1aa   :  { %440 = vmatpush.bf16.msrb.mxu3 %v1221_v62 }
 0x1ae   :  { %511 = vmatpush.bf16.msra.mxu3 %v1230_v63 }
 0x1b2   :  { %512 = vmatpush.bf16.msra.mxu3 %v1229_v0 }
 0x1b6   :  { %513 = vmatpush.bf16.msra.mxu3 %v1228_v1 }
 0x1ba   :  { %514 = vmatpush.bf16.msra.mxu3 %v1227_v2 }
 0x1be   :  { %515 = vmatpush.bf16.msra.mxu3 %v1226_v3 }
 0x1c2   :  { %516 = vmatpush.bf16.msra.mxu3 %v1225_v4 }
 0x1c6   :  { %517 = vmatpush.bf16.msra.mxu3 %v1224_v6 }
 0x1ca   :  { %518 = vmatpush.bf16.msra.mxu3 %v1223_v14 }
 0x228   :  { %v158_v36 = vpop.f32.mrf.mxu3 }
 0x229   :  { %v163_v37 = vpack.c.bf16 %v158_v36, %v158_v36 }
 0x22b   :  { %v165_v38 = vsel %vm164_vm8, %v163_v37, %v145_v26  ;;  %v1292_v26 = vmov 1  }
 0x22c   :  { %242 = vmatmul.bf16.vlgmr.msrb.gmra.mxu0 %v165_v38  ;;  %v1264_v38 = vld [vmem:[%s1666_s17] ss:$0 sm:$0xff] }
 0x230   :  { %v160_v39 = vpop.f32.mrf.mxu3 }
 0x2a9   :  { %v243_v50 = vpop.f32.mrf.mxu0 }
 0x2aa   :  { %v244_v51 = vadd.f32 %v1260_v48, %v243_v50 }
 0x2ac   :  { %v247_v52 = vmax.f32 %v244_v51, 0.0 }
 0x2ae   :  { %v248_v53 = vpack.c.bf16 %v247_v52, %v247_v52 }
 0x2b0   :  { %325 = vmatmul.bf16.vlgmr.msrb.gmra.mxu1 %v248_v53 }
 0x2b1   :  { %v245_v54 = vpop.f32.mrf.mxu0 }
 0x32d   :  { %v326_v58 = vpop.f32.mrf.mxu1 }
 0x32e   :  { %v327_v59 = vadd.f32 %v1261_v57, %v326_v58 }
 0x330   :  { %v330_v60 = vpack.c.bf16 %v327_v59, %v327_v59 }
 0x332   :  { %407 = vmatmul.bf16.vlgmr.msrb.gmra.mxu2 %v330_v60 }
 0x335   :  { %v328_v61 = vpop.f32.mrf.mxu1 }
 0x3b5   :  { %v408_v7 = vpop.f32.mrf.mxu2 }
 0x3b6   :  { %v409_v9 = vadd.f32 %v1262_v5, %v408_v7 }
 0x3b8   :  { %v412_v12 = vpack.c.bf16 %v409_v9, %v409_v9 }
 0x3ba   :  { %1094 = vmatmul.msk.bf16.vlgmr.msrb.gmra.mxu3 %vm429_vm9, %v412_v12 }
 0x3bd   :  { %v410_v13 = vpop.f32.mrf.mxu2 }
 0x43d   :  { %v442_v17 = vpop.f32.mrf.mxu3 }
 0x43e   :  { %v1532_v18 = vpack.c.bf16 %v442_v17, %v442_v17 }
 0x440   :  { %519 = vmatmul.bf16.vlgmr.msra.gmra.mxu3 %v1532_v18  ;;  %532 = vmatpush.bf16.xpose.msra.mxu0 %v1532_v18  ;;  %v569_v19 = vsel %vm105_vm1, %v1532_v18, 0  ;;  %v609_v57 = vunpack.c.l.b16 %v1532_v18 }
 0x441   :  { %578 = vmatpush.bf16.msra.mxu1 %v569_v19 }
 0x442   :  { %v610_v58 = vpack.c.b16 %v609_v57, %v609_v57 }
 0x445   :  { %v444_v21 = vpop.f32.mrf.mxu3 }
 0x447   :  { %533 = vmatmul.bf16.vlgmr.msra.gmra.mxu0 %v524_v20  ;;  %v1263_v20 = vld [vmem:[%s1677_s1] ss:$0 sm:$0xff] }
 0x4c3   :  { %v520_v22 = vpop.f32.mrf.mxu3 }
 0x4c4   :  { %643 = vperm.xlu1 %1256, %v520_v22   ;;  %541 = vperm.xlu0 %1254, %v520_v22   ;;  %v534_v23 = vpop.f32.mrf.mxu0 }
 0x4c5   :  { %v646_v30 = vperm.slane %v534_v23, 2  ;;  %v544_v31 = vperm.slane %v534_v23, 0  ;;  %v699_v43 = vperm.slane %v534_v23, 3  ;;  %v590_v44 = vperm.slane %v534_v23, 1 }
 0x4cb   :  { %v522_v24 = vpop.f32.mrf.mxu3 }
 0x4cc   :  { %1257 = vset.pattern.permute.xlu1 %v1291_v25  ;;  %1255 = vset.pattern.permute.xlu0 %v1292_v26  ;;  %v536_v27 = vpop.f32.mrf.mxu0 }
 0x4cd   :  { %696 = vperm.xlu1 %1257, %v520_v22   ;;  %587 = vperm.xlu0 %1255, %v520_v22  }
 0x4d5   :  { %1258 = vset.pattern.permute.xlu0 %v1290_v16 }
 0x536   :  { %v644_v32 = vpop.permute.xlu1 %643  ;;  %v542_v33 = vpop.permute.xlu0 %541 }
 0x537   :  { %v647_v34 = vadd.f32 %v646_v30, %v644_v32  ;;  %v545_v35 = vadd.f32 %v544_v31, %v542_v33 }
 0x539   :  { %v649_v36 = vmul.f32 0.2, %v647_v34  ;;  %v547_v37 = vmul.f32 0.2, %v545_v35  ;;  %vm648_vm13 = vcmp.ge.f32.partialorder %v647_v34, 0.0  ;;  %vm546_vm14 = vcmp.ge.f32.partialorder %v545_v35, 0.0 }
 0x53b   :  { %v650_v8 = vsel %vm648_vm13, %v647_v34, %v649_v36  ;;  %v548_v39 = vsel %vm546_vm14, %v545_v35, %v547_v37 }
 0x53c   :  { %v651_v10 = vsel %vm1544_vm12, %v650_v8, -1e+30  ;;  %v549_v40 = vsel %vm1544_vm12, %v548_v39, -1e+30 }
 0x53d   :  { %v652_v41 = vsel %vm101_vm2, %v651_v10, -inf  ;;  %v550_v42 = vsel %vm101_vm2, %v549_v40, -inf }
 0x53e   :  { %653 = vmax.xlane.f32.xlu1 %v652_v41  ;;  %551 = vmax.xlane.f32.xlu2 %v550_v42 }
 0x53f   :  { %v697_v45 = vpop.permute.xlu1 %696  ;;  %v588_v46 = vpop.permute.xlu0 %587 }
 0x540   :  { %v700_v47 = vadd.f32 %v699_v43, %v697_v45  ;;  %v591_v48 = vadd.f32 %v590_v44, %v588_v46 }
 0x542   :  { %v593_v49 = vmul.f32 0.2, %v591_v48  ;;  %vm592_vm15 = vcmp.ge.f32.partialorder %v591_v48, 0.0  ;;  %v702_v50 = vmul.f32 0.2, %v700_v47  ;;  %vm701_vm0 = vcmp.ge.f32.partialorder %v700_v47, 0.0 }
 0x544   :  { %v594_v51 = vsel %vm592_vm15, %v591_v48, %v593_v49  ;;  %v703_v54 = vsel %vm701_vm0, %v700_v47, %v702_v50 }
 0x545   :  { %v595_v52 = vsel %vm1544_vm12, %v594_v51, -1e+30  ;;  %v704_v55 = vsel %vm1544_vm12, %v703_v54, -1e+30 }
 0x546   :  { %v596_v53 = vsel %vm101_vm2, %v595_v52, -inf  ;;  %v705_v56 = vsel %vm101_vm2, %v704_v55, -inf }
 0x547   :  { %597 = vmax.xlane.f32.xlu2 %v596_v53 }
 0x54f   :  { %706 = vmax.xlane.f32.xlu2 %v705_v56 }
 0x567   :  { %611 = vrot.lane.b32.xlu2 %v610_v58, %s1293_s11 }
 0x5b1   :  { %v552_v59 = vpop.xlane.xlu2 %551  ;;  %v654_v62 = vpop.xlane.xlu1 %653 }
 0x5b2   :  { %v553_v60 = vsub.f32 %v549_v40, %v552_v59  ;;  %v655_v2 = vsub.f32 %v651_v10, %v654_v62  ;;  %v1238_v59 = vld [vmem:[%s1663_s14 + $0x38] sm:$0xff]  ;;  %v1235_v62 = vld [vmem:[%s1663_s14 + $0x20] sm:$0xff] }
 0x5b4   :  { %v554_v61 = vmul.f32 1.442695, %v553_v60  ;;  %v656_v5 = vmul.f32 1.442695, %v655_v2  ;;  %v1237_v60 = vld [vmem:[%s1663_s14 + $0x30] sm:$0xff]  ;;  %v1231_v2 = vld [vmem:[%s1663_s14] sm:$0xff] }
 0x5b6   :  { %1265 = vpow2.f32 %v554_v61  ;;  %v1236_v61 = vld [vmem:[%s1663_s14 + $0x28] sm:$0xff] }
 0x5ba   :  { %v598_v63 = vpop.xlane.xlu2 %597 }
 0x5bb   :  { %v599_v0 = vsub.f32 %v595_v52, %v598_v63  ;;  %v1234_v63 = vld [vmem:[%s1663_s14 + $0x18] sm:$0xff] }
 0x5bc   :  { %v1266_v1 = vpop.eup %1265 }
 0x5bd   :  { %v600_v3 = vmul.f32 1.442695, %v599_v0  ;;  %v556_v4 = vsel %vm101_vm2, %v1266_v1, 0.0  ;;  %v1233_v0 = vld [vmem:[%s1663_s14 + $0x10] sm:$0xff] }
 0x5be   :  { %557 = vadd.xlane.f32.xlu0 %v556_v4  ;;  %v1245_v4 = vld [vmem:[%s1664_s15 + $0x30] sm:$0xff] }
 0x5bf   :  { %1267 = vpow2.f32 %v600_v3  ;;  %v1246_v3 = vld [vmem:[%s1664_s15 + $0x38] sm:$0xff] }
 0x5c0   :  { %1269 = vpow2.f32 %v656_v5  ;;  %892 = vmatpush.bf16.msrb.mxu3 %v1246_v3  ;;  %v1244_v5 = vld [vmem:[%s1664_s15 + $0x28] sm:$0xff] }
 0x5c2   :  { %v707_v6 = vpop.xlane.xlu2 %706 }
 0x5c3   :  { %v708_v7 = vsub.f32 %v704_v55, %v707_v6  ;;  %v1243_v6 = vld [vmem:[%s1664_s15 + $0x20] sm:$0xff] }
 0x5c4   :  { %893 = vmatpush.bf16.msrb.mxu3 %v1245_v4 }
 0x5c5   :  { %v1268_v9 = vpop.eup %1267  ;;  %v709_v12 = vmul.f32 1.442695, %v708_v7  ;;  %v1242_v7 = vld [vmem:[%s1664_s15 + $0x18] sm:$0xff] }
 0x5c6   :  { %v602_v13 = vsel %vm101_vm2, %v1268_v9, 0.0  ;;  %v1270_v15 = vpop.eup %1269 }
 0x5c7   :  { %1271 = vpow2.f32 %v709_v12  ;;  %603 = vadd.xlane.f32.xlu2 %v602_v13  ;;  %v658_v18 = vsel %vm101_vm2, %v1270_v15, 0.0 }
 0x5c8   :  { %894 = vmatpush.bf16.msrb.mxu3 %v1244_v5 }
 0x5ca   :  { %v612_v14 = vpop.permute.xlu2 %611 }
 0x5cb   :  { %v620_v16 = vsel %vm105_vm1, %v612_v14, 0 }
 0x5cc   :  { %629 = vmatpush.bf16.msra.mxu2 %v620_v16  ;;  %895 = vmatpush.bf16.msrb.mxu3 %v1243_v6 }
 0x5cd   :  { %v1272_v17 = vpop.eup %1271 }
 0x5ce   :  { %v711_v19 = vsel %vm101_vm2, %v1272_v17, 0.0 }
 0x5cf   :  { %659 = vadd.xlane.f32.xlu2 %v658_v18  ;;  %712 = vadd.xlane.f32.xlu1 %v711_v19  ;;  %v1239_v18 = vld [vmem:[%s1664_s15] sm:$0xff] }
 0x5d0   :  { %814 = vmatpush.bf16.msrb.mxu2 %v1238_v59  ;;  %896 = vmatpush.bf16.msrb.mxu3 %v1242_v7 }
 0x5d2   :  { %717 = vrot.lane.b32.xlu0 %v610_v58, %s1294_s12 }
 0x5d4   :  { %815 = vmatpush.bf16.msrb.mxu2 %v1237_v60 }
 0x5d8   :  { %816 = vmatpush.bf16.msrb.mxu2 %v1236_v61 }
 0x5dc   :  { %817 = vmatpush.bf16.msrb.mxu2 %v1235_v62 }
 0x5e0   :  { %818 = vmatpush.bf16.msrb.mxu2 %v1234_v63 }
 0x5e4   :  { %819 = vmatpush.bf16.msrb.mxu2 %v1233_v0 }
 0x5e7   :  { %664 = vrot.lane.b32.xlu2 %v610_v58, %s1295_s5 }
 0x5e8   :  { %613 = vrot.lane.b32.xlu1 %v1263_v20, %s1293_s11 }
 0x5ef   :  { %666 = vrot.lane.b32.xlu2 %v1263_v20, %s1295_s5 }
 0x5f7   :  { %719 = vrot.lane.b32.xlu2 %v1263_v20, %s1294_s12 }
 0x631   :  { %v558_v21 = vpop.xlane.xlu0 %557 }
 0x632   :  { %1273 = vrcp.f32 %v558_v21 }
 0x638   :  { %v1274_v22 = vpop.eup %1273 }
 0x639   :  { %v560_v23 = vmul.f32 %v1274_v22, %v1266_v1  ;;  %v1232_v1 = vld [vmem:[%s1663_s14 + $0x8] sm:$0xff]  ;;  %v905_v22 = vld [vmem:[%s1665_s16] sm:$0x1] }
 0x63a   :  { %v604_v24 = vpop.xlane.xlu2 %603  ;;  %820 = vmatpush.bf16.msrb.mxu2 %v1232_v1 }
 0x63b   :  { %1275 = vrcp.f32 %v604_v24  ;;  %v561_v25 = vpack.c.bf16 %v560_v23, %v560_v23 }
 0x63d   :  { %1127 = vmatmul.msk.bf16.vlgmr.msra.gmra.mxu1 %vm101_vm2, %v561_v25 }
 0x63e   :  { %821 = vmatpush.bf16.msrb.mxu2 %v1231_v2 }
 0x641   :  { %v1276_v26 = vpop.eup %1275 }
 0x642   :  { %v606_v27 = vmul.f32 %v1276_v26, %v1268_v9  ;;  %v713_v28 = vpop.xlane.xlu1 %712  ;;  %v660_v29 = vpop.xlane.xlu2 %659  ;;  %v1241_v9 = vld [vmem:[%s1664_s15 + $0x10] sm:$0xff] }
 0x643   :  { %1277 = vrcp.f32 %v713_v28  ;;  %897 = vmatpush.bf16.msrb.mxu3 %v1241_v9 }
 0x644   :  { %v607_v30 = vpack.c.bf16 %v606_v27, %v606_v27  ;;  %1279 = vrcp.f32 %v660_v29  ;;  %v718_v31 = vpop.permute.xlu0 %717 }
 0x645   :  { %v726_v32 = vsel %vm105_vm1, %v718_v31, 0 }
 0x646   :  { %1128 = vmatmul.msk.bf16.vlgmr.msra.gmra.mxu2 %vm101_vm2, %v607_v30  ;;  %735 = vmatpush.bf16.msrb.mxu1 %v726_v32 }
 0x649   :  { %v1278_v33 = vpop.eup %1277 }
 0x64a   :  { %v1280_v34 = vpop.eup %1279  ;;  %v715_v35 = vmul.f32 %v1278_v33, %v1272_v17  ;;  %v665_v36 = vpop.permute.xlu2 %664 }
 0x64b   :  { %v662_v37 = vmul.f32 %v1280_v34, %v1270_v15  ;;  %v673_v8 = vsel %vm105_vm1, %v665_v36, 0  ;;  %v1240_v15 = vld [vmem:[%s1664_s15 + $0x8] sm:$0xff] }
 0x64c   :  { %v716_v39 = vpack.c.bf16 %v715_v35, %v715_v35  ;;  %682 = vmatpush.bf16.msrb.mxu0 %v673_v8  ;;  %898 = vmatpush.bf16.msrb.mxu3 %v1240_v15 }
 0x64d   :  { %v663_v10 = vpack.c.bf16 %v662_v37, %v662_v37 }
 0x64e   :  { %1130 = vmatmul.msk.bf16.vlgmr.msrb.gmra.mxu1 %vm101_vm2, %v716_v39 }
 0x64f   :  { %1129 = vmatmul.msk.bf16.vlgmr.msrb.gmra.mxu0 %vm101_vm2, %v663_v10 }
 0x650   :  { %899 = vmatpush.bf16.msrb.mxu3 %v1239_v18 }
 0x652   :  { %v667_v43 = vpop.permute.xlu2 %666 }
 0x65a   :  { %v614_v45 = vpop.permute.xlu1 %613  ;;  %v720_v47 = vpop.permute.xlu2 %719 }
 0x6ba   :  { %v580_v40 = vpop.f32.mrf.mxu1 }
 0x6bb   :  { %v581_v41 = vadd.f32 %v1263_v20, %v580_v40 }
 0x6bd   :  { %v584_v42 = vmax.f32 %v581_v41, 0.0 }
 0x6bf   :  { %585 = vst.msk [vmem:[#allocation2] sm:$0xff] %vm429_vm9, %v584_v42 }
 0x6c2   :  { %v582_v44 = vpop.f32.mrf.mxu1 }
 0x6c9   :  { %v631_v46 = vpop.f32.mrf.mxu2 }
 0x6ca   :  { %v632_v48 = vadd.f32 %v631_v46, %v614_v45 }
 0x6cb   :  { %v737_v49 = vpop.f32.mrf.mxu1 }
 0x6cc   :  { %v635_v50 = vmax.f32 %v632_v48, 0.0  ;;  %v738_v51 = vadd.f32 %v737_v49, %v720_v47  ;;  %v684_v52 = vpop.f32.mrf.mxu0 }
 0x6cd   :  { %v685_v53 = vadd.f32 %v684_v52, %v667_v43 }
 0x6ce   :  { %v741_v54 = vmax.f32 %v738_v51, 0.0  ;;  %637 = vrot.lane.b32.xlu0 %v635_v50, %s1294_s12 }
 0x6cf   :  { %v688_v55 = vmax.f32 %v685_v53, 0.0 }
 0x6d0   :  { %743 = vrot.lane.b32.xlu1 %v741_v54, %s1293_s11 }
 0x6d1   :  { %v633_v56 = vpop.f32.mrf.mxu2  ;;  %690 = vrot.lane.b32.xlu2 %v688_v55, %s1295_s5 }
 0x6d3   :  { %v739_v57 = vpop.f32.mrf.mxu1 }
 0x6d4   :  { %v686_v58 = vpop.f32.mrf.mxu0 }
 0x72b   :  { %v691_v13 = vpop.permute.xlu2 %690 }
 0x740   :  { %v638_v12 = vpop.permute.xlu0 %637 }
 0x741   :  { %641 = vst.msk [vmem:[#allocation2] sm:$0xff] %vm640_vm3, %v638_v12 }
 0x742   :  { %v744_v14 = vpop.permute.xlu1 %743  ;;  %694 = vst.msk [vmem:[#allocation2] sm:$0xff] %vm693_vm4, %v691_v13 }
 0x743   :  { %747 = vst.msk [vmem:[#allocation2] sm:$0xff] %vm746_vm5, %v744_v14 }
 0x74a   :  { %v748_v16 = vld [vmem:[#allocation2] sm:$0xff] }
 0x74b   :  { %v749_v17 = vpack.c.bf16 %v748_v16, %v748_v16 }
 0x74d   :  { %822 = vmatmul.bf16.vlgmr.msrb.gmra.mxu2 %v749_v17 }
 0x7d0   :  { %v823_v19 = vpop.f32.mrf.mxu2 }
 0x7d1   :  { %v827_v20 = vpack.c.bf16 %v823_v19, %v823_v19 }
 0x7d3   :  { %900 = vmatmul.bf16.vlgmr.msrb.gmra.mxu3 %v827_v20  ;;  %913 = vmatpush.bf16.xpose.msra.mxu0 %v827_v20  ;;  %v950_v21 = vsel %vm105_vm1, %v827_v20, 0  ;;  %vm965_vm1 = vcmp.lt.s32.totalorder %v1409_v11, 4 }
 0x7d4   :  { %959 = vmatpush.bf16.msra.mxu1 %v950_v21 }
 0x7d8   :  { %v825_v23 = vpop.f32.mrf.mxu2 }
 0x7da   :  { %914 = vmatmul.bf16.vlgmr.msra.gmra.mxu0 %v905_v22 }
 0x856   :  { %v901_v24 = vpop.f32.mrf.mxu3 }
 0x857   :  { %921 = vperm.xlu0 %1258, %v901_v24   ;;  %v915_v25 = vpop.f32.mrf.mxu0 }
 0x858   :  { %v924_v28 = vperm.slane %v915_v25, 0 }
 0x85e   :  { %v903_v26 = vpop.f32.mrf.mxu3 }
 0x85f   :  { %v917_v27 = vpop.f32.mrf.mxu0 }
 0x8c9   :  { %v922_v29 = vpop.permute.xlu0 %921 }
 0x8ca   :  { %v925_v30 = vadd.f32 %v924_v28, %v922_v29 }
 0x8cc   :  { %v927_v31 = vmul.f32 0.2, %v925_v30  ;;  %vm926_vm6 = vcmp.ge.f32.partialorder %v925_v30, 0.0 }
 0x8ce   :  { %v928_v32 = vsel %vm926_vm6, %v925_v30, %v927_v31 }
 0x8cf   :  { %v929_v33 = vsel %vm1544_vm12, %v928_v32, -1e+30 }
 0x8d0   :  { %v930_v34 = vsel %vm101_vm2, %v929_v33, -inf }
 0x8d1   :  { %931 = vmax.xlane.f32.xlu2 %v930_v34 }
 0x944   :  { %v932_v35 = vpop.xlane.xlu2 %931 }
 0x945   :  { %v933_v36 = vsub.f32 %v929_v33, %v932_v35 }
 0x947   :  { %v934_v37 = vmul.f32 1.442695, %v933_v36 }
 0x949   :  { %1281 = vpow2.f32 %v934_v37 }
 0x94f   :  { %v1282_v8 = vpop.eup %1281 }
 0x950   :  { %v936_v39 = vsel %vm101_vm2, %v1282_v8, 0.0 }
 0x951   :  { %937 = vadd.xlane.f32.xlu1 %v936_v39 }
 0x9c4   :  { %v938_v10 = vpop.xlane.xlu1 %937 }
 0x9c5   :  { %1283 = vrcp.f32 %v938_v10 }
 0x9cb   :  { %v1284_v40 = vpop.eup %1283 }
 0x9cc   :  { %v940_v41 = vmul.f32 %v1284_v40, %v1282_v8 }
 0x9ce   :  { %v941_v42 = vpack.c.bf16 %v940_v41, %v940_v41 }
 0x9d0   :  { %1195 = vmatmul.msk.bf16.vlgmr.msra.gmra.mxu1 %vm101_vm2, %v941_v42 }
 0xa4d   :  { %v961_v43 = vpop.f32.mrf.mxu1 }
 0xa4e   :  { %v962_v44 = vadd.f32 %v1264_v38, %v961_v43 }
 0xa50   :  { %v966_v45 = vsel %vm965_vm1, %v962_v44, -1e+30 }
 0xa51   :  { %967 = vmax.xlane.f32.xlu0 %v966_v45 }
 0xa55   :  { %v963_v46 = vpop.f32.mrf.mxu1 }
 0xac4   :  { %v968_v47 = vpop.xlane.xlu0 %967 }
 0xac5   :  { %v969_v48 = vsub.f32 %v966_v45, %v968_v47 }
 0xac7   :  { %v970_v49 = vmul.f32 1.442695, %v969_v48 }
 0xac9   :  { %1285 = vpow2.f32 %v970_v49 }
 0xacf   :  { %v1286_v50 = vpop.eup %1285 }
 0xad0   :  { %972 = vadd.xlane.f32.xlu2 %v1286_v50 }
 0xb43   :  { %v973_v51 = vpop.xlane.xlu2 %972 }
 0xb44   :  { %1287 = vlog2.f32 %v973_v51 }
 0xb4a   :  { %v1288_v52 = vpop.eup %1287 }
 0xb4b   :  { %v975_v53 = vmul.f32 0.6931472, %v1288_v52 }
 0xb4d   :  { %v976_v54 = vsub.f32 %v969_v48, %v975_v53 }
 0xb4f   :  { %977 = vst [vmem:[%s1667_s18] sm:$0xff] %v976_v54 }

</bundles_post_ra>
